<compile_context>
chip_gen: v7x
topology: tpu7x:2x2x1
jax: 0.10.0
libtpu: 0.0.40
codegen_flags: <defaults>
</compile_context>

<pallas_src>
import math

import numpy as np
import jax
import jax.numpy as jnp
from jax import lax
from jax.experimental import pallas as pl
from jax.experimental.pallas import tpu as pltpu

# ----------------------------------------------------------------------------
# PhaserModel constants (synthesized deterministically, see TODO above)
# ----------------------------------------------------------------------------
SR = 44100.0
MIN_LFO_RATE_HZ = 0.05
MAX_LFO_RATE_HZ = 3.0
ORDER = 6          # PhaserModel.ORDER
H = 32             # hidden width of the (synthetic) coefficient MLP
SUB = 8            # inner unroll (sublane-aligned chunk) of the recurrence

AMP = 1.0          # model.lfo.amp
BIAS = 0.3         # model.bias
DEPTH = 0.5        # model.depth
B3 = 0.0           # last Linear bias of the MLP
G_DRY = 0.5        # dry gain of the sample-based phaser mix
G_WET = 0.5        # wet gain of the sample-based phaser mix
PIO4 = math.pi / 4.0
HALF_DEPTH = DEPTH * 0.5


def _init_params():
    """Deterministic synthetic MLP params: Linear(1,H)->tanh->Linear(H,H)->tanh->Linear(H,1)."""
    k1, k2, k3, k4, k5 = jax.random.split(jax.random.PRNGKey(42), 5)
    w1 = jax.random.uniform(k1, (1, H), jnp.float32, -0.5, 0.5)
    b1 = jax.random.uniform(k2, (1, H), jnp.float32, -0.1, 0.1)
    w2 = jax.random.uniform(k3, (H, H), jnp.float32, -0.1, 0.1)
    b2 = jax.random.uniform(k4, (1, H), jnp.float32, -0.1, 0.1)
    w3 = jax.random.uniform(k5, (1, H), jnp.float32, -0.3, 0.3)  # used as row vector
    return (w1, b1, w2, b2, w3)


def _pick_tile(total, candidates):
    for c in candidates:
        if total % c == 0:
            return c
    return total


# ----------------------------------------------------------------------------
# Kernel 1: LFO -> MLP -> allpass coefficient p = tanh(tan(pi/4 - d))
# Lane-dense layout: lanes = flattened (channel, time) samples,
# sublanes = hidden features (H=32).
# ----------------------------------------------------------------------------
def _mlp_coeff_kernel(arg_ref, w1_ref, b1_ref, w2t_ref, b2_ref, w3_ref, p_ref):
    # arg_ref/p_ref: (1, tile_m); w1/b1/b2: (H, 1); w2t: (H, H); w3: (1, H)
    lfo = AMP * jnp.cos(arg_ref[...])                                    # (1, tm)
    h = jnp.tanh(w1_ref[...] * lfo + b1_ref[...])                        # (H, tm)  Linear(1, H)
    h = jnp.tanh(jnp.dot(w2t_ref[...], h,
                         preferred_element_type=jnp.float32)
                 + b2_ref[...])                                          # (H, tm)  Linear(H, H), MXU
    out = jnp.dot(w3_ref[...], h,
                  preferred_element_type=jnp.float32) + B3               # (1, tm)  Linear(H, 1), MXU
    d = BIAS + HALF_DEPTH * (1.0 + out)
    # (1 - tan d) / (1 + tan d) == tan(pi/4 - d); one divide removed, other -> EUP vrcp
    u = PIO4 - d
    t = jnp.sin(u) * pl.reciprocal(jnp.cos(u), approx=True)
    p_ref[...] = jnp.tanh(t)


def mlp_coeffs(arg_row, w1, b1, w2, b2, w3, *, tile_m=None):
    """arg_row: (1, M) with M = 2 * n_samples (channel-major flattening)."""
    m = arg_row.shape[1]
    if tile_m is None:
        tile_m = _pick_tile(m, (1024, 512, 256, 128))
    assert m % tile_m == 0 and tile_m % 128 == 0

    # transposed ("features on sublanes") weight layout for the kernel
    w1c, b1c, w2t, b2c = w1.T, b1.T, w2.T, b2.T

    return pl.pallas_call(
        _mlp_coeff_kernel,
        out_shape=jax.ShapeDtypeStruct((1, m), jnp.float32),
        grid=(m // tile_m,),
        in_specs=[
            pl.BlockSpec((1, tile_m), lambda i: (0, i)),
            pl.BlockSpec((H, 1), lambda i: (0, 0)),
            pl.BlockSpec((H, 1), lambda i: (0, 0)),
            pl.BlockSpec((H, H), lambda i: (0, 0)),
            pl.BlockSpec((H, 1), lambda i: (0, 0)),
            pl.BlockSpec((1, H), lambda i: (0, 0)),
        ],
        out_specs=pl.BlockSpec((1, tile_m), lambda i: (0, i)),
        compiler_params=pltpu.CompilerParams(dimension_semantics=("parallel",)),
    )(arg_row, w1c, b1c, w2t, b2c, w3)


# ----------------------------------------------------------------------------
# Kernel 2: sample-based phaser = cascade of ORDER time-varying first-order
# allpass filters (TDF-II: y = p*x + z ; z' = x - p*y), 50/50 dry/wet mix.
# Time-tiled grid ("arbitrary"); 6x2 state carried in the resident zo block;
# inner loop processes aligned (SUB, 2) chunks with an unrolled register loop.
# ----------------------------------------------------------------------------
def _phaser_chunk_kernel(x_ref, p_ref, zi_ref, y_ref, zo_ref):
    @pl.when(pl.program_id(0) == 0)
    def _():
        zo_ref[...] = zi_ref[...]

    tile_t = x_ref.shape[0]
    n_sub = tile_t // SUB
    row_ids = lax.broadcasted_iota(jnp.int32, (SUB, 2), 0)          # hoisted out of the loop
    z0 = tuple(zo_ref[k:k + 1, :] for k in range(ORDER))            # ORDER x (1, 2)

    def body(j, z):
        base = pl.multiple_of(j * SUB, SUB)
        x_blk = x_ref[pl.ds(base, SUB), :]                          # one aligned (8, 2) load
        p_blk = p_ref[pl.ds(base, SUB), :]
        wet_blk = jnp.zeros((SUB, 2), jnp.float32)
        for n in range(SUB):                                        # unrolled, register-resident
            x_n = x_blk[n:n + 1, :]                                 # (1, 2)
            p_n = p_blk[n:n + 1, :]
            v = x_n
            zs = []
            for zk in z:                                            # unrolled ORDER stages
                apo = p_n * v + zk
                zs.append(v - p_n * apo)
                v = apo
            z = tuple(zs)
            wet_blk = jnp.where(row_ids == n, v, wet_blk)
        y_ref[pl.ds(base, SUB), :] = G_DRY * x_blk + G_WET * wet_blk  # one aligned (8, 2) store
        return z

    zf = lax.fori_loop(0, n_sub, body, z0)
    for k in range(ORDER):
        zo_ref[k:k + 1, :] = zf[k]


def phaser_sample_based(x_tc, p_tc, zi_oc, *, tile_t=None):
    t = x_tc.shape[0]
    if tile_t is None:
        tile_t = _pick_tile(t, (512, 256, 128, 64, 32, 16, 8))
    assert t % tile_t == 0 and tile_t % SUB == 0, "n_samples must be a multiple of 8"

    return pl.pallas_call(
        _phaser_chunk_kernel,
        out_shape=(jax.ShapeDtypeStruct((t, 2), jnp.float32),
                   jax.ShapeDtypeStruct((ORDER, 2), jnp.float32)),
        grid=(t // tile_t,),
        in_specs=[
            pl.BlockSpec((tile_t, 2), lambda i: (i, 0)),
            pl.BlockSpec((tile_t, 2), lambda i: (i, 0)),
            pl.BlockSpec((ORDER, 2), lambda i: (0, 0)),
        ],
        out_specs=(
            pl.BlockSpec((tile_t, 2), lambda i: (i, 0)),
            pl.BlockSpec((ORDER, 2), lambda i: (0, 0)),   # same block every step -> carried state
        ),
        compiler_params=pltpu.CompilerParams(dimension_semantics=("arbitrary",)),
    )(x_tc, p_tc, zi_oc)


# ----------------------------------------------------------------------------
# Glue: PhaserModel.forward (functional: returns y, next_phase, next_zi)
# ----------------------------------------------------------------------------
def _make_argument(n_samples, freq, phase):
    # matches tr.cumsum(2*pi*freq/sr, ...) + phase in float64 (host numpy; no x64 JAX needed)
    step = 2.0 * math.pi * freq / SR
    return np.cumsum(np.full((n_samples,), step, dtype=np.float64)) + phase


def phaser_forward(x, lfo_rate_0to1, lfo_stereo_phase_offset_0to1, prev_phase, zi, params,
                   *, recurrence_tile_t=None):
    assert x.ndim == 2 and x.shape[0] == 2
    n = x.shape[-1]
    assert n % SUB == 0

    lfo_rate = float(lfo_rate_0to1) * (MAX_LFO_RATE_HZ - MIN_LFO_RATE_HZ) + MIN_LFO_RATE_HZ
    offset = float(lfo_stereo_phase_offset_0to1) * 2.0 * math.pi

    arg_l = _make_argument(n, lfo_rate, float(prev_phase))       # float64, like torch double
    next_phase = float(arg_l[-1] % (2.0 * math.pi))
    arg_r = arg_l + offset
    arg = np.stack([arg_l, arg_r], axis=0)                       # (2, n)

    # --- coefficient MLP (Pallas kernel 1), lane-dense over flattened (c, t) ---
    arg_row = jnp.asarray(arg.reshape(1, 2 * n), dtype=jnp.float32)
    p_row = mlp_coeffs(arg_row, *params)                         # (1, 2n)
    p = p_row.reshape(2, n)

    # --- sample-based phaser recurrence (Pallas kernel 2), time-major layout ---
    x_tc = jnp.asarray(x, jnp.float32).T                         # (n, 2)
    p_tc = p.T                                                   # (n, 2)
    zi_oc = jnp.asarray(zi, jnp.float32).T                       # (ORDER, 2)
    y_tc, zo_oc = phaser_sample_based(x_tc, p_tc, zi_oc, tile_t=recurrence_tile_t)

    return y_tc.T, next_phase, zo_oc.T


# ----------------------------------------------------------------------------
# Pure-JAX reference (for correctness check)
# ----------------------------------------------------------------------------
def _reference_forward(x, lfo_rate_0to1, lfo_stereo_phase_offset_0to1, prev_phase, zi, params):
    w1, b1, w2, b2, w3 = params
    n = x.shape[-1]
    lfo_rate = float(lfo_rate_0to1) * (MAX_LFO_RATE_HZ - MIN_LFO_RATE_HZ) + MIN_LFO_RATE_HZ
    offset = float(lfo_stereo_phase_offset_0to1) * 2.0 * math.pi
    arg_l = _make_argument(n, lfo_rate, float(prev_phase))
    arg = jnp.asarray(np.stack([arg_l, arg_l + offset], 0), jnp.float32)   # (2, n)

    lfo = (AMP * jnp.cos(arg))[..., None]                                  # (2, n, 1)
    h = jnp.tanh(lfo * w1 + b1)
    h = jnp.tanh(jnp.einsum("cth,hk->ctk", h, w2,
                            precision=lax.Precision.HIGHEST) + b2)
    out = jnp.sum(h * w3, axis=-1) + B3                                    # (2, n)
    d = BIAS + HALF_DEPTH * (1.0 + out)
    t = jnp.sin(d) / jnp.cos(d)
    p = jnp.tanh((1.0 - t) / (1.0 + t))

    def step(z, inp):                 # z: (2, ORDER); inp: ((2,), (2,))
        x_n, p_n = inp
        v = x_n
        zs = []
        for k in range(ORDER):
            apo = p_n * v + z[:, k]
            zs.append(v - p_n * apo)
            v = apo
        return jnp.stack(zs, axis=1), G_DRY * x_n + G_WET * v

    z_final, ys = lax.scan(step, jnp.asarray(zi, jnp.float32), (x.T, p.T))
    return ys.T, z_final


# ----------------------------------------------------------------------------
if __name__ == "__main__":
    key = jax.random.PRNGKey(0)
    k_x, k_z = jax.random.split(key)

    n_samples = 1024                                  # small stereo block (~23 ms @ 44.1 kHz)
    x = jax.random.normal(k_x, (2, n_samples), dtype=jnp.float32)
    zi = 0.01 * jax.random.normal(k_z, (2, ORDER), dtype=jnp.float32)
    lfo_rate_0to1 = 0.5
    lfo_stereo_phase_offset_0to1 = 0.25
    prev_phase = 0.0
    params = _init_params()

    # default tiling: kernel 1 grid=(2,) with tile_m=1024, kernel 2 grid=(2,)
    # with tile_t=512 (exercises the cross-tile state carry).
    y, next_phase, next_zi = phaser_forward(
        x, lfo_rate_0to1, lfo_stereo_phase_offset_0to1, prev_phase, zi, params)
    jax.block_until_ready((y, next_zi))

    y_ref, zi_ref = _reference_forward(
        x, lfo_rate_0to1, lfo_stereo_phase_offset_0to1, prev_phase, zi, params)

    assert y.shape == x.shape and next_zi.shape == zi.shape
    assert bool(jnp.all(jnp.isfinite(y)))
    assert jnp.allclose(y, y_ref, atol=2e-2, rtol=2e-2)
    assert jnp.allclose(next_zi, zi_ref, atol=2e-2, rtol=2e-2)

    print("KERNEL_OK")
</pallas_src>

<mosaic_0001>
module attributes {stable_mosaic.version = 11 : i64} {
  func.func @_mlp_coeff_kernel(%arg0: i32, %arg1: memref<1x1024xf32, #tpu.memory_space<vmem>>, %arg2: memref<32x1xf32, #tpu.memory_space<vmem>>, %arg3: memref<32x1xf32, #tpu.memory_space<vmem>>, %arg4: memref<32x32xf32, #tpu.memory_space<vmem>>, %arg5: memref<32x1xf32, #tpu.memory_space<vmem>>, %arg6: memref<1x32xf32, #tpu.memory_space<vmem>>, %arg7: memref<1x1024xf32, #tpu.memory_space<vmem>>) attributes {dimension_semantics = [#tpu.dimension_semantics<parallel>], iteration_bounds = array<i64: 2>, scalar_prefetch = 0 : i64, scratch_operands = 0 : i64, tpu.core_type = #tpu.core_type<tc>, window_params = [{transform_indices = @transform_0, window_bounds = array<i64: 1, 1024>}, {pipeline_mode = #tpu.pipeline_mode<synchronous>, transform_indices = @transform_1, window_bounds = array<i64: 32, 1>}, {pipeline_mode = #tpu.pipeline_mode<synchronous>, transform_indices = @transform_2, window_bounds = array<i64: 32, 1>}, {pipeline_mode = #tpu.pipeline_mode<synchronous>, transform_indices = @transform_3, window_bounds = array<i64: 32, 32>}, {pipeline_mode = #tpu.pipeline_mode<synchronous>, transform_indices = @transform_4, window_bounds = array<i64: 32, 1>}, {pipeline_mode = #tpu.pipeline_mode<synchronous>, transform_indices = @transform_5, window_bounds = array<i64: 1, 32>}, {transform_indices = @transform_6, window_bounds = array<i64: 1, 1024>}]} {
    %c0 = arith.constant 0 : index
    %c0_0 = arith.constant 0 : index
    %0 = vector.load %arg1[%c0, %c0_0] : memref<1x1024xf32, #tpu.memory_space<vmem>>, vector<1x1024xf32>
    %1 = math.cos %0 : vector<1x1024xf32>
    %cst = arith.constant 1.000000e+00 : f32
    %2 = vector.broadcast %cst : f32 to vector<1x1024xf32>
    %3 = arith.mulf %2, %1 : vector<1x1024xf32>
    %c0_1 = arith.constant 0 : index
    %c0_2 = arith.constant 0 : index
    %4 = vector.load %arg2[%c0_1, %c0_2] : memref<32x1xf32, #tpu.memory_space<vmem>>, vector<32x1xf32>
    %5 = vector.broadcast %4 : vector<32x1xf32> to vector<32x1024xf32>
    %6 = vector.broadcast %3 : vector<1x1024xf32> to vector<32x1024xf32>
    %7 = arith.mulf %5, %6 : vector<32x1024xf32>
    %c0_3 = arith.constant 0 : index
    %c0_4 = arith.constant 0 : index
    %8 = vector.load %arg3[%c0_3, %c0_4] : memref<32x1xf32, #tpu.memory_space<vmem>>, vector<32x1xf32>
    %9 = vector.broadcast %8 : vector<32x1xf32> to vector<32x1024xf32>
    %10 = arith.addf %7, %9 : vector<32x1024xf32>
    %11 = math.tanh %10 : vector<32x1024xf32>
    %c0_5 = arith.constant 0 : index
    %c0_6 = arith.constant 0 : index
    %12 = vector.load %arg4[%c0_5, %c0_6] : memref<32x32xf32, #tpu.memory_space<vmem>>, vector<32x32xf32>
    %cst_7 = arith.constant dense<0.000000e+00> : vector<32x1024xf32>
    %13 = tpu.matmul %12, %11, %cst_7 {dimension_numbers = #tpu.dot_dimension_numbers<[1], [0], [0], [1], [0, 0, 1, 1], [], []>} : vector<32x32xf32>, vector<32x1024xf32>, vector<32x1024xf32> -> vector<32x1024xf32>
    %c0_8 = arith.constant 0 : index
    %c0_9 = arith.constant 0 : index
    %14 = vector.load %arg5[%c0_8, %c0_9] : memref<32x1xf32, #tpu.memory_space<vmem>>, vector<32x1xf32>
    %15 = vector.broadcast %14 : vector<32x1xf32> to vector<32x1024xf32>
    %16 = arith.addf %13, %15 : vector<32x1024xf32>
    %17 = math.tanh %16 : vector<32x1024xf32>
    %c0_10 = arith.constant 0 : index
    %c0_11 = arith.constant 0 : index
    %18 = vector.load %arg6[%c0_10, %c0_11] : memref<1x32xf32, #tpu.memory_space<vmem>>, vector<1x32xf32>
    %cst_12 = arith.constant dense<0.000000e+00> : vector<1x1024xf32>
    %19 = tpu.matmul %18, %17, %cst_12 {dimension_numbers = #tpu.dot_dimension_numbers<[1], [0], [0], [1], [0, 0, 1, 1], [], []>} : vector<1x32xf32>, vector<32x1024xf32>, vector<1x1024xf32> -> vector<1x1024xf32>
    %cst_13 = arith.constant 0.000000e+00 : f32
    %20 = vector.broadcast %cst_13 : f32 to vector<1x1024xf32>
    %21 = arith.addf %19, %20 : vector<1x1024xf32>
    %cst_14 = arith.constant 1.000000e+00 : f32
    %22 = vector.broadcast %cst_14 : f32 to vector<1x1024xf32>
    %23 = arith.addf %22, %21 : vector<1x1024xf32>
    %cst_15 = arith.constant 2.500000e-01 : f32
    %24 = vector.broadcast %cst_15 : f32 to vector<1x1024xf32>
    %25 = arith.mulf %24, %23 : vector<1x1024xf32>
    %cst_16 = arith.constant 3.000000e-01 : f32
    %26 = vector.broadcast %cst_16 : f32 to vector<1x1024xf32>
    %27 = arith.addf %26, %25 : vector<1x1024xf32>
    %cst_17 = arith.constant 0.785398185 : f32
    %28 = vector.broadcast %cst_17 : f32 to vector<1x1024xf32>
    %29 = arith.subf %28, %27 : vector<1x1024xf32>
    %30 = math.sin %29 : vector<1x1024xf32>
    %31 = math.cos %29 : vector<1x1024xf32>
    %32 = tpu.reciprocal %31 {approx = true} : vector<1x1024xf32> -> vector<1x1024xf32>
    %33 = arith.mulf %30, %32 : vector<1x1024xf32>
    %34 = math.tanh %33 : vector<1x1024xf32>
    %c0_18 = arith.constant 0 : index
    %c0_19 = arith.constant 0 : index
    %35 = vector.load %arg7[%c0_18, %c0_19] : memref<1x1024xf32, #tpu.memory_space<vmem>>, vector<1x1024xf32>
    tpu.vector_store %arg7[%c0_18, %c0_19], %34 {strides = array<i32>} : memref<1x1024xf32, #tpu.memory_space<vmem>>, vector<1x1024xf32>,
    return
  }
  func.func @transform_0(%arg0: i32) -> (i32, i32) {
    %c0_i32 = arith.constant 0 : i32
    %c0_i32_0 = arith.constant 0 : i32
    return %c0_i32, %arg0 : i32, i32
  }
  func.func @transform_1(%arg0: i32) -> (i32, i32) {
    %c0_i32 = arith.constant 0 : i32
    %c0_i32_0 = arith.constant 0 : i32
    %c0_i32_1 = arith.constant 0 : i32
    return %c0_i32, %c0_i32_0 : i32, i32
  }
  func.func @transform_2(%arg0: i32) -> (i32, i32) {
    %c0_i32 = arith.constant 0 : i32
    %c0_i32_0 = arith.constant 0 : i32
    %c0_i32_1 = arith.constant 0 : i32
    return %c0_i32, %c0_i32_0 : i32, i32
  }
  func.func @transform_3(%arg0: i32) -> (i32, i32) {
    %c0_i32 = arith.constant 0 : i32
    %c0_i32_0 = arith.constant 0 : i32
    %c0_i32_1 = arith.constant 0 : i32
    return %c0_i32, %c0_i32_0 : i32, i32
  }
  func.func @transform_4(%arg0: i32) -> (i32, i32) {
    %c0_i32 = arith.constant 0 : i32
    %c0_i32_0 = arith.constant 0 : i32
    %c0_i32_1 = arith.constant 0 : i32
    return %c0_i32, %c0_i32_0 : i32, i32
  }
  func.func @transform_5(%arg0: i32) -> (i32, i32) {
    %c0_i32 = arith.constant 0 : i32
    %c0_i32_0 = arith.constant 0 : i32
    %c0_i32_1 = arith.constant 0 : i32
    return %c0_i32, %c0_i32_0 : i32, i32
  }
  func.func @transform_6(%arg0: i32) -> (i32, i32) {
    %c0_i32 = arith.constant 0 : i32
    %c0_i32_0 = arith.constant 0 : i32
    return %c0_i32, %arg0 : i32, i32
  }
}

</mosaic_0001>

<bundles_post_ra>
// kernel: tpu_custom_call.1
= control target key start
LH: loop header
LB: loop body
LE: loop exit
PB: predicated region body
PF: predicated region fallthrough
CT: control target
= control target key end

     0   :  { %11 = vsyncpa [#allocation3], 0  ;;  %s4894_s0 = inlined_call_operand.vmem [shape: f32[1,2048], index: 0, kind: input, shape index: {}]   ;;  %s4895_s1 = inlined_call_operand.vmem [shape: f32[32,1], index: 1, kind: input, shape index: {}]   ;;  %s4896_s2 = inlined_call_operand.vmem [shape: f32[32,1], index: 2, kind: input, shape index: {}]   ;;  %s4897_s3 = inlined_call_operand.vmem [shape: f32[32,32], index: 3, kind: input, shape index: {}]   ;;  %s4898_s4 = inlined_call_operand.vmem [shape: f32[32,1], index: 4, kind: input, shape index: {}]   ;;  %s4899_s5 = inlined_call_operand.vmem [shape: f32[1,32], index: 5, kind: input, shape index: {}]   ;;  %s4900_s6 = inlined_call_operand.hbm [shape: f32[1,2048], index: 6, kind: output, shape index: {}]  }
   0x1   :  { %13 = vsyncpa [#allocation3 + $0x1], 0  ;;  %s3645_s21 = smov 0   ;;  %s3647_s22 = smov 0  }
   0x2   :  { %s3649_s23 = smov 0   ;;  %s3651_s24 = smov 0  }
   0x3 LB: > { %s3666_s25 = sadd.s32 4294967295, %s3598_s24   ;;  %s3090_s26 = sadd.s32 4294967294, %s3598_s24   ;;  %s3598_s24 = sphi %s3651_s24, %s4937_s24   ;;  %s3594_s23 = sphi %s3649_s23, %s4936_s23   ;;  %s3590_s22 = sphi %s3647_s22, %s4935_s22   ;;  %s3586_s21 = sphi %s3645_s21, %s4934_s21  }
   0x4   : > { %s3670_s27 = sadd.s32 1, %s3598_s24   ;;  %s157_s28 = sadd.s32 1, %s3594_s23 }
   0x5   : > { %s154_s29 = ssub.s32 %s3598_s24, %s3670_s27  ;;  %p167_p0 = scmp.ne.s32.totalorder %s3594_s23, %s3590_s22 }
   0x6   : > { %p155_p1 = scmp.eq.s32.totalorder %s154_s29, 0  ;;  %p168_p2 = scmp.eq.s32.totalorder %s3666_s25, 1 }
   0x7   : > { %p173_p3 = scmp.ne.s32.totalorder %s3590_s22, %s3586_s21  ;;  %p174_p4 = scmp.eq.s32.totalorder %s3090_s26, 1 }
   0x8   : > { %s3681_s30 = scalar_select %p155_p1, %s3594_s23, %s157_s28  }
   0x9   : > { %p3683_p5 = por %p168_p2, %p167_p0  ;;  %p3687_p6 = por %p174_p4, %p173_p3 }
   0xa   : > { %p3093_p7 = scmp.ge.s32.totalorder %s3598_s24, 1  ;;  %p215_p8 = scmp.lt.s32.totalorder %s3598_s24, 3 }
   0xc   : > { %p216_p9 = pnand %p3093_p7, %p215_p8 }
   0xd   : > { %v451_v0 = vld [vmem:[%s4896_s2] sm:$0xff] (!%p216_p9)  ;;  %s3095_s13 = sshll.u32 (!%p216_p9), %s3666_s25, 3  ;;  %v3600_v2 = vmov (!%p216_p9), 0   ;;  %v452_v3 = vld [vmem:[%s4896_s2 + $0x8] sm:$0xff] (!%p216_p9)  ;;  %v357_v6 = vld [vmem:[%s4895_s1 + $0x18] sm:$0xff] (!%p216_p9)  ;;  %vm567_vm13 = vcmask (!%p216_p9), 261120  }
   0xe   : > { %219 = sbr.rel (%p216_p9) target bundleno = 925 (0x39d), region = 44  ;;  %v354_v1 = vld [vmem:[%s4895_s1] sm:$0xff] (!%p216_p9)  ;;  %3339 = vset.pattern.permute.xlu1 (!%p216_p9), %v3600_v2  ;;  %3338 = vset.pattern.permute.xlu0 (!%p216_p9), %v3600_v2  ;;  %p245_p10 = scmp.lt.s32.totalorder (!%p216_p9), %s3095_s13, 15  ;;  %v355_v4 = vld [vmem:[%s4895_s1 + $0x8] sm:$0xff] (!%p216_p9)  ;;  %v356_v7 = vld [vmem:[%s4895_s1 + $0x10] sm:$0xff] (!%p216_p9) }
   0xf   : > { %457 = vperm.xlu1 (!%p216_p9), %3339, %v451_v0   ;;  %360 = vperm.xlu0 (!%p216_p9), %3338, %v354_v1   ;;  %v454_v11 = vld [vmem:[%s4896_s2 + $0x18] sm:$0xff] (!%p216_p9)  ;;  %v453_v12 = vld [vmem:[%s4896_s2 + $0x10] sm:$0xff] (!%p216_p9)  ;;  %v544_v16 = vld [vmem:[%s4898_s4 + $0x8] sm:$0xff] (!%p216_p9)  ;;  %v3601_v25 = vmov (!%p216_p9), 683565275   ;;  %s241_s17 = sand.u32 (!%p216_p9), 1, %s3590_s22  }
  0x10   : > { %v543_v17 = vld [vmem:[%s4898_s4] sm:$0xff] (!%p216_p9)  ;;  %v546_v22 = vld [vmem:[%s4898_s4 + $0x18] sm:$0xff] (!%p216_p9)  ;;  %v545_v23 = vld [vmem:[%s4898_s4 + $0x10] sm:$0xff] (!%p216_p9)  ;;  %v4910_v27 = vmov (!%p216_p9), 2475754826   ;;  %s3094_s18 = sshll.u32 (!%p216_p9), %s241_s17, 3 }
  0x11   : > { %v4908_v29 = vmov (!%p216_p9), 2131351028   ;;  %v4906_v31 = vmov (!%p216_p9), 2102212464   ;;  %v3605_v33 = vmov (!%p216_p9), 920167782  }
  0x12   : > { %v3606_v40 = vmov (!%p216_p9), 1326507024   ;;  %s3189_s19 = sshll.u32 (!%p216_p9), %s3666_s25, 7  ;;  %s3020_s10 = scalar_lea.sflag (!%p216_p9), [#allocation3], %s241_s17 }
  0x13   : > { %462 = vperm.xlu1 (!%p216_p9), %3339, %v452_v3   ;;  %365 = vperm.xlu0 (!%p216_p9), %3338, %v355_v4   ;;  %s4852_s9 = scalar_lea.hbm (!%p216_p9), %s4900_s6, %s3189_s19  ;;  %s3609_s25 = smov (!%p216_p9), [#allocation2]  }
  0x14   : > { %s3540_s12 = sshll.u32 (!%p216_p9), %s3609_s25, 4  ;;  %s3541_s12 = int_to_ptr.vmem [resolvable:$false] %s3540_s12 }
  0x15   : > { %s4939_s13 = smov (!%p245_p10, %s3095_s13), 15 }
  0x16   : > { %s247_s20 = scalar_lea.vmem %s4894_s0, %s4939_s13  ;;  %s3542_s13 = scalar_lea.vmem %s3541_s12, 256 }
  0x17   : > { %v3709_v5 = vld [vmem:[%s247_s20] sm:$0xff]  ;;  %375 = vperm.xlu1 %3339, %v357_v6   ;;  %370 = vperm.xlu0 %3338, %v356_v7   ;;  %v3607_v7 = vmov 0.0   ;;  %s243_s20 = scalar_lea.vmem [#allocation2], %s3094_s18 }
  0x18   : > { %v254_v8 = vand.u32 2139095040, %v3709_v5  ;;  %v251_v10 = vand.u32 2147483647, %v3709_v5  ;;  %644 = vmatprep.mubr.f32.mxu0 %v3607_v7  ;;  %733 = vmatprep.mubr.f32.mxu1 %v3607_v7  ;;  %vm253_vm7 = vcmp.lt.s32.totalorder %v3709_v5, 0  ;;  %vm343_vm12 = vweird.f32 %v3709_v5  ;;  %s3034_s26 = sshll.u32 %s243_s20, 4  ;;  %s4854_s26 = int_to_ptr.vmem [resolvable:$true] %s3034_s26 }
  0x19   : > { %s3536_s11 = scalar_lea.vmem %s4854_s26, 128  ;;  %p3543_p0 = scmp.lt.s32.totalorder %s4854_s26, %s3541_s12 }
  0x1a   : > { %v255_v9 = vshrl.u32 %v254_v8, 23  ;;  %v258_v15 = vand.u32 8388607, %v251_v10  ;;  %vm252_vm8 = vcmp.le.f32.partialorder %v251_v10, 0.7853982  ;;  %p3537_p11 = scmp.ne.s32.totalorder %s4854_s26, %s3536_s11  ;;  %p3544_p1 = scmp.lt.s32.totalorder %s3542_s13, %s3536_s11 }
  0x1b   : > { %472 = vperm.xlu1 %3339, %v454_v11   ;;  %467 = vperm.xlu0 %3338, %v453_v12  }
  0x1c   : > { %v3096_v13 = vadd.s32 4294967169, %v255_v9  ;;  %v259_v20 = vor.u32 8388608, %v258_v15  ;;  %p3538_p12 = pnand %p3537_p11, %p3683_p5  ;;  %p3545_p2 = por %p3544_p1, %p3543_p0 }
  0x1e   : > { %v261_v14 = vadd.s32 1, %v3096_v13  ;;  %v299_v42 = vshll.u32 %v259_v20, 8  ;;  %p3539_p13 = pneg %p3538_p12 }
  0x1f   : > { %554 = vperm.xlu1 %3339, %v544_v16   ;;  %549 = vperm.xlu0 %3338, %v543_v17  }
  0x20   : > { %vm262_vm0 = vcmp.gt.s32.totalorder %v261_v14, 0  ;;  %p3546_p3 = pnand %p3545_p2, %p3539_p13 }
  0x21   : > { %v263_v18 = vsel %vm262_vm0, %v261_v14, 0 }
  0x22   : > { %v265_v19 = vand.u32 31, %v263_v18  ;;  %v264_v21 = vshrl.u32 %v263_v18, 5 }
  0x23   : > { %564 = vperm.xlu1 %3339, %v546_v22   ;;  %559 = vperm.xlu0 %3338, %v545_v23  }
  0x24   : > { %v266_v24 = vsub.s32 32, %v265_v19  ;;  %v268_v26 = vshll.u32 %v3601_v25, %v265_v19  ;;  %v271_v28 = vshll.u32 %v4910_v27, %v265_v19  ;;  %v274_v30 = vshll.u32 %v4908_v29, %v265_v19 }
  0x25   : > { %v277_v32 = vshll.u32 %v4906_v31, %v265_v19  ;;  %v280_v34 = vshll.u32 %v3605_v33, %v265_v19  ;;  %vm283_vm1 = vcmp.lt.s32.totalorder %v264_v21, 1  ;;  %vm286_vm2 = vcmp.lt.s32.totalorder %v264_v21, 4 }
  0x26   : > { %v267_v35 = vshrl.u32 %v3601_v25, %v266_v24  ;;  %v269_v36 = vshrl.u32 %v4910_v27, %v266_v24  ;;  %v272_v37 = vshrl.u32 %v4908_v29, %v266_v24  ;;  %v275_v38 = vshrl.u32 %v4906_v31, %v266_v24 }
  0x27   : > { %v278_v39 = vshrl.u32 %v3605_v33, %v266_v24  ;;  %v281_v41 = vshrl.u32 %v3606_v40, %v266_v24  ;;  %vm284_vm3 = vcmp.lt.s32.totalorder %v264_v21, 2  ;;  %vm285_vm4 = vcmp.lt.s32.totalorder %v264_v21, 3 }
  0x28   : > { %v270_v43 = vor.u32 %v269_v36, %v268_v26  ;;  %v273_v44 = vor.u32 %v272_v37, %v271_v28  ;;  %v276_v45 = vor.u32 %v275_v38, %v274_v30 }
  0x29   : > { %v279_v46 = vor.u32 %v278_v39, %v277_v32  ;;  %v282_v47 = vor.u32 %v281_v41, %v280_v34 }
  0x2a   : > { %v287_v48 = vsel %vm283_vm1, %v267_v35, %v270_v43  ;;  %v288_v49 = vsel %vm286_vm2, %v276_v45, 2102212464  ;;  %v291_v50 = vsel %vm283_vm1, %v270_v43, %v273_v44  ;;  %v295_v51 = vsel %vm283_vm1, %v273_v44, %v276_v45 }
  0x2b   : > { %v289_v52 = vsel %vm285_vm4, %v273_v44, %v288_v49  ;;  %v292_v53 = vsel %vm286_vm2, %v279_v46, 920167782  ;;  %v296_v54 = vsel %vm286_vm2, %v282_v47, 1326507024 }
  0x2c   : > { %v293_v55 = vsel %vm285_vm4, %v276_v45, %v292_v53  ;;  %v297_v56 = vsel %vm285_vm4, %v279_v46, %v296_v54  ;;  %v290_v57 = vsel %vm284_vm3, %v287_v48, %v289_v52  ;;  %v379_v45 = vlaneseq }
  0x2d   : > { %v294_v58 = vsel %vm284_vm3, %v291_v50, %v293_v55  ;;  %v298_v59 = vsel %vm284_vm3, %v295_v51, %v297_v56  ;;  %v306_v0 = vmul.u32 %v299_v42, %v290_v57 }
  0x2e   : > { %v3750_v60 = vmul.u32.u64.low %v299_v42, %v298_v59  ;;  %v3751_v61 = vmul.u32.u64.high %v299_v42, %v298_v59, %v3750_v60  ;;  %v3753_v62 = vmul.u32.u64.low %v299_v42, %v294_v58  ;;  %v3754_v63 = vmul.u32.u64.high %v299_v42, %v294_v58, %v3753_v62 }
  0x2f   : > { %v3766_v10 = vshrl.u32 %v379_v45, 7 }
  0x30   : > { %vm308_vm5 = vc.u32 %v3751_v61, %v3753_v62  ;;  %v309_v1 = vadd.s32 1, %v3754_v63  ;;  %v307_v17 = vadd.s32 %v3753_v62, %v3751_v61 }
  0x31   : > { %v385_v49 = vsub.s32 1, %v3766_v10  ;;  %v393_v50 = vsub.s32 3, %v3766_v10  ;;  %v381_v52 = vsub.s32 0, %v3766_v10  ;;  %v389_v53 = vsub.s32 2, %v3766_v10 }
  0x32   : > { %v310_v2 = vsel %vm308_vm5, %v309_v1, %v3754_v63 }
  0x33   : > { %v311_v3 = vadd.s32 %v310_v2, %v306_v0 }
  0x35   : > { %v312_v4 = vadd.s32 536870912, %v311_v3 }
  0x37   : > { %v313_v6 = vshrl.u32 %v312_v4, 30 }
  0x39   : > { %v314_v8 = vshll.u32 %v313_v6, 30  ;;  %v337_v36 = vsub.s32 4, %v313_v6 }
  0x3b   : > { %v315_v9 = vsub.s32 %v311_v3, %v314_v8  ;;  %v338_v37 = vsel %vm253_vm7, %v337_v36, %v313_v6  ;;  %v401_v8 = vsub.s32 5, %v3766_v10 }
  0x3c   : > { %v340_v38 = vsel %vm252_vm8, 0, %v338_v37 }
  0x3d   : > { %v317_v11 = vsub.s32 0, %v315_v9  ;;  %v344_v42 = vand.u32 3, %v340_v38 }
  0x3f   : > { %v3097_v12 = vmin.u32 %v317_v11, %v315_v9  ;;  %vm346_vm9 = vcmp.eq.s32.totalorder %v344_v42, 0  ;;  %vm349_vm10 = vcmp.eq.s32.totalorder %v344_v42, 2  ;;  %vm345_vm11 = vcmp.lt.s32.totalorder %v344_v42, 2 }
  0x41   : > { %v319_v13 = vclz %v3097_v12 }
  0x43   : > { %v3098_v14 = vadd.s32 4294967294, %v319_v13 }
  0x45   : > { %vm3099_vm6 = vcmp.lt.s32.totalorder %v3098_v14, 0 }
  0x46   : > { %v322_v15 = vsel %vm3099_vm6, 0, %v3098_v14 }
  0x47   : > { %v327_v16 = vsub.s32 4294967266, %v322_v15  ;;  %v323_v18 = vsub.s32 32, %v322_v15  ;;  %v324_v20 = vshll.u32 %v315_v9, %v322_v15 }
  0x49   : > { %v328_v19 = vadd.s32 127, %v327_v16  ;;  %v325_v21 = vshrl.u32 %v307_v17, %v323_v18  ;;  %v409_v18 = vsub.s32 7, %v3766_v10 }
  0x4b   : > { %v329_v22 = vshll.u32 %v328_v19, 23  ;;  %v326_v23 = vor.u32 %v325_v21, %v324_v20  ;;  %v397_v20 = vsub.s32 4, %v3766_v10  ;;  %v405_v21 = vsub.s32 6, %v3766_v10 }
  0x4d   : > { %v330_v24 = vor.u32 4788187, %v329_v22  ;;  %v333_v28 = vcvt.s32.f32 %v326_v23 }
  0x4f   : > { %v331_v26 = vand.u32 2147483647, %v330_v24 }
  0x51   : > { %v334_v30 = vmul.f32 %v333_v28, %v331_v26 }
  0x53   : > { %v335_v32 = vxor.u32 2147483648, %v334_v30 }
  0x55   : > { %v336_v34 = vsel %vm253_vm7, %v335_v32, %v334_v30 }
  0x56   : > { %v339_v35 = vsel %vm252_vm8, %v3709_v5, %v336_v34 }
  0x57   : > { %3340 = vcosq.f32 %v339_v35 }
  0x58   : > { %3342 = vsinq.f32 %v339_v35 }
  0x61   : > { %v3341_v39 = vpop.eup %3340 }
  0x62   : > { %v3343_v41 = vpop.eup %3342  ;;  %v350_v44 = vxor.u32 2147483648, %v3341_v39 }
  0x63   : > { %v347_v43 = vxor.u32 2147483648, %v3343_v41 }
  0x64   : > { %v351_v47 = vsel %vm349_vm10, %v350_v44, %v3343_v41 }
  0x65   : > { %v348_v46 = vsel %vm346_vm9, %v3341_v39, %v347_v43 }
  0x66   : > { %v352_v48 = vsel %vm345_vm11, %v348_v46, %v351_v47 }
  0x67   : > { %v3771_v51 = vsel %vm343_vm12, nan, %v352_v48 }
  0x68   : > { %v386_v54 = vrot.slane %v3771_v51, %v385_v49  ;;  %v394_v55 = vrot.slane %v3771_v51, %v393_v50  ;;  %v382_v56 = vrot.slane %v3771_v51, %v381_v52  ;;  %v390_v57 = vrot.slane %v3771_v51, %v389_v53 }
  0x69   : > { %v3812_v22 = vrot.slane %v3771_v51, %v401_v8  ;;  %v3824_v35 = vrot.slane %v3771_v51, %v409_v18  ;;  %v3830_v39 = vrot.slane %v3771_v51, %v397_v20  ;;  %v3843_v52 = vrot.slane %v3771_v51, %v405_v21 }
  0x8e   : > { %v3779_v5 = vpop.permute.xlu1 %457  ;;  %v3781_v58 = vpop.permute.xlu0 %360 }
  0x8f   : > { %v420_v59 = vmul.f32 %v386_v54, %v3781_v58  ;;  %v422_v60 = vmul.f32 %v394_v55, %v3781_v58  ;;  %v419_v61 = vmul.f32 %v382_v56, %v3781_v58  ;;  %v421_v62 = vmul.f32 %v390_v57, %v3781_v58 }
  0x90   : > { %v424_v45 = vmul.f32 %v3812_v22, %v3781_v58 }
  0x91   : > { %v476_v63 = vadd.f32 %v3779_v5, %v420_v59  ;;  %v478_v0 = vadd.f32 %v3779_v5, %v422_v60  ;;  %v475_v3 = vadd.f32 %v3779_v5, %v419_v61  ;;  %v477_v6 = vadd.f32 %v3779_v5, %v421_v62 }
  0x92   : > { %v3789_v1 = vpop.permute.xlu1 %462  ;;  %v3791_v2 = vpop.permute.xlu0 %365  ;;  %v423_v60 = vmul.f32 %v3830_v39, %v3781_v58  ;;  %v480_v51 = vadd.f32 %v3779_v5, %v424_v45 }
  0x93   : > { %v428_v4 = vmul.f32 %v386_v54, %v3791_v2  ;;  %3344 = vtanh.f32 %v476_v63  ;;  %v430_v9 = vmul.f32 %v394_v55, %v3791_v2  ;;  %v427_v11 = vmul.f32 %v382_v56, %v3791_v2 }
  0x94   : > { %v429_v12 = vmul.f32 %v390_v57, %v3791_v2  ;;  %3346 = vtanh.f32 %v478_v0  ;;  %v432_v49 = vmul.f32 %v3812_v22, %v3791_v2  ;;  %v431_v62 = vmul.f32 %v3830_v39, %v3791_v2 }
  0x95   : > { %v484_v13 = vadd.f32 %v3789_v1, %v428_v4  ;;  %v486_v16 = vadd.f32 %v3789_v1, %v430_v9  ;;  %v483_v17 = vadd.f32 %v3789_v1, %v427_v11  ;;  %3348 = vtanh.f32 %v475_v3 }
  0x96   : > { %v3801_v14 = vpop.permute.xlu1 %375  ;;  %v3803_v15 = vpop.permute.xlu0 %370  ;;  %v485_v19 = vadd.f32 %v3789_v1, %v429_v12  ;;  %3350 = vtanh.f32 %v477_v6  ;;  %v488_v63 = vadd.f32 %v3789_v1, %v432_v49  ;;  %v425_v3 = vmul.f32 %v3843_v52, %v3781_v58 }
  0x97   : > { %3352 = vtanh.f32 %v484_v13  ;;  %v436_v23 = vmul.f32 %v386_v54, %v3803_v15  ;;  %v444_v24 = vmul.f32 %v386_v54, %v3801_v14  ;;  %v438_v26 = vmul.f32 %v394_v55, %v3803_v15 }
  0x98   : > { %3354 = vtanh.f32 %v486_v16  ;;  %v446_v32 = vmul.f32 %v394_v55, %v3801_v14  ;;  %v435_v34 = vmul.f32 %v382_v56, %v3803_v15  ;;  %v443_v42 = vmul.f32 %v382_v56, %v3801_v14 }
  0x99   : > { %3356 = vtanh.f32 %v483_v17  ;;  %v437_v44 = vmul.f32 %v390_v57, %v3803_v15  ;;  %v445_v48 = vmul.f32 %v390_v57, %v3801_v14  ;;  %v426_v54 = vmul.f32 %v3824_v35, %v3781_v58 }
  0x9a   : > { %v3817_v28 = vpop.permute.xlu1 %472  ;;  %v3819_v30 = vpop.permute.xlu0 %467  ;;  %3358 = vtanh.f32 %v485_v19  ;;  %v434_v57 = vmul.f32 %v3824_v35, %v3791_v2  ;;  %v433_v9 = vmul.f32 %v3843_v52, %v3791_v2  ;;  %v479_v17 = vadd.f32 %v3779_v5, %v423_v60 }
  0x9b   : > { %v492_v36 = vadd.f32 %v3819_v30, %v436_v23  ;;  %v500_v37 = vadd.f32 %v3817_v28, %v444_v24  ;;  %v494_v38 = vadd.f32 %v3819_v30, %v438_v26  ;;  %v502_v41 = vadd.f32 %v3817_v28, %v446_v32 }
  0x9c   : > { %v491_v43 = vadd.f32 %v3819_v30, %v435_v34  ;;  %v499_v47 = vadd.f32 %v3817_v28, %v443_v42  ;;  %v493_v53 = vadd.f32 %v3819_v30, %v437_v44  ;;  %v501_v56 = vadd.f32 %v3817_v28, %v445_v48 }
  0x9d   : > { %3360 = vtanh.f32 %v492_v36  ;;  %v3345_v46 = vpop.eup %3344  ;;  %v482_v6 = vadd.f32 %v3779_v5, %v426_v54  ;;  %v490_v12 = vadd.f32 %v3789_v1, %v434_v57  ;;  %v487_v18 = vadd.f32 %v3789_v1, %v431_v62 }
  0x9e   : > { %3362 = vtanh.f32 %v500_v37  ;;  %v3347_v50 = vpop.eup %3346  ;;  %v481_v2 = vadd.f32 %v3779_v5, %v425_v3  ;;  %v440_v20 = vmul.f32 %v3812_v22, %v3803_v15  ;;  %v489_v23 = vadd.f32 %v3789_v1, %v433_v9 }
  0x9f   : > { %3364 = vtanh.f32 %v494_v38  ;;  %v3349_v55 = vpop.eup %3348  ;;  %v448_v24 = vmul.f32 %v3812_v22, %v3801_v14  ;;  %v442_v36 = vmul.f32 %v3824_v35, %v3803_v15  ;;  %v450_v38 = vmul.f32 %v3824_v35, %v3801_v14 }
  0xa0   : > { %3366 = vtanh.f32 %v502_v41  ;;  %v3351_v59 = vpop.eup %3350  ;;  %v496_v34 = vadd.f32 %v3819_v30, %v440_v20  ;;  %v439_v1 = vmul.f32 %v3830_v39, %v3803_v15  ;;  %v447_v44 = vmul.f32 %v3830_v39, %v3801_v14  ;;  %v3941_v20 = vpop.permute.xlu0 %549 }
  0xa1   : > { %3368 = vtanh.f32 %v491_v43  ;;  %v3353_v61 = vpop.eup %3352  ;;  %v504_v37 = vadd.f32 %v3817_v28, %v448_v24  ;;  %v498_v42 = vadd.f32 %v3819_v30, %v442_v36  ;;  %v506_v45 = vadd.f32 %v3817_v28, %v450_v38 }
  0xa2   : > { %3370 = vtanh.f32 %v499_v47  ;;  %v3355_v0 = vpop.eup %3354  ;;  %v3190_v4 = vpack.c.bf16 %v3353_v61, %v3345_v46  ;;  %v441_v35 = vmul.f32 %v3843_v52, %v3803_v15  ;;  %v495_v48 = vadd.f32 %v3819_v30, %v439_v1 }
  0xa3   : > { %3372 = vtanh.f32 %v493_v53  ;;  %v3357_v8 = vpop.eup %3356  ;;  %v3198_v11 = vpack.c.bf16 %v3355_v0, %v3347_v50  ;;  %v449_v50 = vmul.f32 %v3843_v52, %v3801_v14  ;;  %v503_v53 = vadd.f32 %v3817_v28, %v447_v44 }
  0xa4   : > { %3374 = vtanh.f32 %v501_v56  ;;  %v3359_v13 = vpop.eup %3358  ;;  %3191 = vmatprep.subr.bf16.mxu0 %v3190_v4  ;;  %v3192_v16 = vpack.c.bf16 %v3357_v8, %v3349_v55  ;;  %v3892_v55 = vld [vmem:[%s4897_s3] sm:$0xff]  ;;  %v497_v15 = vadd.f32 %v3819_v30, %v441_v35  ;;  %v540_v30 = vld [vmem:[%s4897_s3 + $0x8] sm:$0xff]  ;;  %v541_v4 = vld [vmem:[%s4897_s3 + $0x10] sm:$0xff] }
  0xa5   : > { %3376 = vtanh.f32 %v480_v51  ;;  %3199 = vmatprep.subr.bf16.mxu1 %v3198_v11  ;;  %v3200_v58 = vpack.c.bf16 %v3359_v13, %v3351_v59  ;;  %v505_v57 = vadd.f32 %v3817_v28, %v449_v50 }
  0xa6   : > { %3378 = vtanh.f32 %v488_v63  ;;  %3193 = vmatpush1.bf16.msra.mxu0 %v3192_v16  ;;  %v542_v16 = vld [vmem:[%s4897_s3 + $0x18] sm:$0xff] }
  0xa7   : > { %v3361_v19 = vpop.eup %3360  ;;  %3380 = vtanh.f32 %v482_v6  ;;  %3201 = vmatpush1.bf16.msra.mxu1 %v3200_v58 }
  0xa8   : > { %v3363_v21 = vpop.eup %3362  ;;  %3382 = vtanh.f32 %v490_v12 }
  0xa9   : > { %v3365_v26 = vpop.eup %3364  ;;  %v3194_v32 = vpack.c.bf16 %v3363_v21, %v3361_v19  ;;  %3384 = vtanh.f32 %v479_v17 }
  0xaa   : > { %v3367_v5 = vpop.eup %3366  ;;  %3386 = vtanh.f32 %v487_v18 }
  0xab   : > { %v3369_v41 = vpop.eup %3368  ;;  %3195 = vmatprep.subr.bf16.mxu0 %v3194_v32  ;;  %v3202_v22 = vpack.c.bf16 %v3367_v5, %v3365_v26  ;;  %3388 = vtanh.f32 %v481_v2  ;;  %v3946_v5 = vpop.permute.xlu1 %554 }
  0xac   : > { %v3371_v43 = vpop.eup %3370  ;;  %3390 = vtanh.f32 %v489_v23 }
  0xad   : > { %v3373_v46 = vpop.eup %3372  ;;  %3203 = vmatprep.subr.bf16.mxu1 %v3202_v22  ;;  %v3196_v47 = vpack.c.bf16 %v3371_v43, %v3369_v41  ;;  %3392 = vtanh.f32 %v496_v34 }
  0xae   : > { %v3375_v49 = vpop.eup %3374  ;;  %3394 = vtanh.f32 %v504_v37 }
  0xaf   : > { %v3377_v39 = vpop.eup %3376  ;;  %3197 = vmatpush1.bf16.msra.mxu0 %v3196_v47  ;;  %v3204_v54 = vpack.c.bf16 %v3375_v49, %v3373_v46  ;;  %3396 = vtanh.f32 %v498_v42 }
  0xb0   : > { %v3379_v56 = vpop.eup %3378  ;;  %3398 = vtanh.f32 %v506_v45  ;;  %v3952_v45 = vpop.permute.xlu0 %559 }
  0xb1   : > { %v3381_v14 = vpop.eup %3380  ;;  %3205 = vmatpush1.bf16.msra.mxu1 %v3204_v54  ;;  %v3206_v52 = vpack.c.bf16 %v3379_v56, %v3377_v39  ;;  %3400 = vtanh.f32 %v495_v48  ;;  %v3958_v54 = vpop.permute.xlu1 %564 }
  0xb2   : > { %v3383_v59 = vpop.eup %3382  ;;  %3100 = vmatmul.mubr.msk.f32.vlgmr.msra.gmra.mrb[0].mxu0 %vm567_vm13, %v3892_v55  ;;  %3402 = vtanh.f32 %v503_v53 }
  0xb3   : > { %v3385_v60 = vpop.eup %3384  ;;  %3207 = vmatprep.subr.bf16.mxu0 %v3206_v52  ;;  %v3214_v51 = vpack.c.bf16 %v3383_v59, %v3381_v14  ;;  %650 = vmatprep.mubr.f32.mxu0 %v3607_v7  ;;  %3404 = vtanh.f32 %v497_v15 }
  0xb4   : > { %v3387_v28 = vpop.eup %3386  ;;  %3104 = vmatmul.mubr.msk.f32.vlgmr.msra.gmra.mrb[0].mxu1 %vm567_vm13, %v3892_v55  ;;  %3406 = vtanh.f32 %v505_v57 }
  0xb5   : > { %v3389_v61 = vpop.eup %3388  ;;  %3215 = vmatprep.subr.bf16.mxu1 %v3214_v51  ;;  %v3208_v62 = vpack.c.bf16 %v3387_v28, %v3385_v60  ;;  %739 = vmatprep.mubr.f32.mxu1 %v3607_v7 }
  0xb6   : > { %v3391_v63 = vpop.eup %3390  ;;  %3101 = vmatmul.mubr.msk.f32.gmra.mrb[2].mxu0 %vm567_vm13, %v540_v30 }
  0xb7   : > { %v3393_v0 = vpop.eup %3392  ;;  %3209 = vmatpush1.bf16.msra.mxu0 %v3208_v62  ;;  %v3216_v3 = vpack.c.bf16 %v3391_v63, %v3389_v61  ;;  %656 = vmatprep.mubr.f32.mxu0 %v3607_v7 }
  0xb8   : > { %v3395_v6 = vpop.eup %3394  ;;  %3105 = vmatmul.mubr.msk.f32.gmra.mrb[2].mxu1 %vm567_vm13, %v540_v30 }
  0xb9   : > { %v3397_v8 = vpop.eup %3396  ;;  %3217 = vmatpush1.bf16.msra.mxu1 %v3216_v3  ;;  %v3210_v9 = vpack.c.bf16 %v3395_v6, %v3393_v0  ;;  %745 = vmatprep.mubr.f32.mxu1 %v3607_v7 }
  0xba   : > { %v3399_v11 = vpop.eup %3398  ;;  %3102 = vmatmul.mubr.msk.f32.gmra.mrb[4].mxu0 %vm567_vm13, %v541_v4 }
  0xbb   : > { %v3401_v12 = vpop.eup %3400  ;;  %3211 = vmatprep.subr.bf16.mxu0 %v3210_v9  ;;  %v3218_v13 = vpack.c.bf16 %v3399_v11, %v3397_v8  ;;  %662 = vmatprep.mubr.f32.mxu0 %v3607_v7 }
  0xbc   : > { %v3403_v17 = vpop.eup %3402  ;;  %3106 = vmatmul.mubr.msk.f32.gmra.mrb[4].mxu1 %vm567_vm13, %v541_v4 }
  0xbd   : > { %v3405_v58 = vpop.eup %3404  ;;  %3219 = vmatprep.subr.bf16.mxu1 %v3218_v13  ;;  %v3212_v18 = vpack.c.bf16 %v3403_v17, %v3401_v12  ;;  %751 = vmatprep.mubr.f32.mxu1 %v3607_v7 }
  0xbe   : > { %v3407_v19 = vpop.eup %3406  ;;  %3103 = vmatmul.mubr.msk.f32.gmra.mrb[6].mxu0 %vm567_vm13, %v542_v16 }
  0xbf   : > { %3213 = vmatpush1.bf16.msra.mxu0 %v3212_v18  ;;  %v3220_v2 = vpack.c.bf16 %v3407_v19, %v3405_v58  ;;  %822 = vmatprep.mubr.f32.mxu0 %v3607_v7 }
  0xc0   : > { %3107 = vmatmul.mubr.msk.f32.gmra.mrb[6].mxu1 %vm567_vm13, %v542_v16 }
  0xc1   : > { %3221 = vmatpush1.bf16.msra.mxu1 %v3220_v2  ;;  %911 = vmatprep.mubr.f32.mxu1 %v3607_v7 }
  0xc2   : > { %3108 = vmatmul.mubr.msk.f32.vlgmr.msra.gmra.mrb[8].mxu0 %vm567_vm13, %v3892_v55 }
  0xc3   : > { %828 = vmatprep.mubr.f32.mxu0 %v3607_v7 }
  0xc4   : > { %3112 = vmatmul.mubr.msk.f32.vlgmr.msra.gmra.mrb[8].mxu1 %vm567_vm13, %v3892_v55 }
  0xc5   : > { %917 = vmatprep.mubr.f32.mxu1 %v3607_v7 }
  0xc6   : > { %3109 = vmatmul.mubr.msk.f32.gmra.mrb[10].mxu0 %vm567_vm13, %v540_v30 }
  0xc7   : > { %834 = vmatprep.mubr.f32.mxu0 %v3607_v7 }
  0xc8   : > { %3113 = vmatmul.mubr.msk.f32.gmra.mrb[10].mxu1 %vm567_vm13, %v540_v30 }
  0xc9   : > { %923 = vmatprep.mubr.f32.mxu1 %v3607_v7 }
  0xca   : > { %3110 = vmatmul.mubr.msk.f32.gmra.mrb[12].mxu0 %vm567_vm13, %v541_v4 }
  0xcb   : > { %840 = vmatprep.mubr.f32.mxu0 %v3607_v7 }
  0xcc   : > { %3114 = vmatmul.mubr.msk.f32.gmra.mrb[12].mxu1 %vm567_vm13, %v541_v4 }
  0xcd   : > { %929 = vmatprep.mubr.f32.mxu1 %v3607_v7 }
  0xce   : > { %3111 = vmatmul.mubr.msk.f32.gmra.mrb[14].mxu0 %vm567_vm13, %v542_v16 }
  0xcf   : > { %1036 = vmatprep.mubr.f32.mxu0 %v3607_v7 }
  0xd0   : > { %3115 = vmatmul.mubr.msk.f32.gmra.mrb[14].mxu1 %vm567_vm13, %v542_v16 }
  0xd1   : > { %1107 = vmatprep.mubr.f32.mxu1 %v3607_v7 }
 0x185   : > { %v646_v21 = vpop.f32.mrb[0].mxu0 }
 0x186   : > { %v647_v23 = vadd.f32 %v646_v21, %v3941_v20  ;;  %v648_v24 = vpop.f32.mrb[1].mxu0 }
 0x187   : > { %v735_v26 = vpop.f32.mrb[0].mxu1  ;;  %v649_v32 = vadd.f32 %v648_v24, %v3941_v20 }
 0x188   : > { %3408 = vtanh.f32 %v647_v23  ;;  %v736_v34 = vadd.f32 %v735_v26, %v3941_v20  ;;  %v737_v36 = vpop.f32.mrb[1].mxu1 }
 0x189   : > { %3410 = vtanh.f32 %v649_v32  ;;  %v738_v37 = vadd.f32 %v737_v36, %v3941_v20  ;;  %v652_v38 = vpop.f32.mrb[2].mxu0 }
 0x18a   : > { %3412 = vtanh.f32 %v736_v34  ;;  %v653_v41 = vadd.f32 %v652_v38, %v3946_v5  ;;  %v654_v1 = vpop.f32.mrb[3].mxu0 }
 0x18b   : > { %3414 = vtanh.f32 %v738_v37  ;;  %v741_v22 = vpop.f32.mrb[2].mxu1  ;;  %v655_v42 = vadd.f32 %v654_v1, %v3946_v5 }
 0x18c   : > { %3416 = vtanh.f32 %v653_v41  ;;  %v742_v43 = vadd.f32 %v741_v22, %v3946_v5  ;;  %v743_v44 = vpop.f32.mrb[3].mxu1 }
 0x18d   : > { %3418 = vtanh.f32 %v655_v42  ;;  %v744_v46 = vadd.f32 %v743_v44, %v3946_v5  ;;  %v658_v35 = vpop.f32.mrb[4].mxu0 }
 0x18e   : > { %3420 = vtanh.f32 %v742_v43  ;;  %v659_v47 = vadd.f32 %v658_v35, %v3952_v45  ;;  %v660_v48 = vpop.f32.mrb[5].mxu0 }
 0x18f   : > { %3422 = vtanh.f32 %v744_v46  ;;  %v747_v49 = vpop.f32.mrb[4].mxu1  ;;  %v661_v50 = vadd.f32 %v660_v48, %v3952_v45 }
 0x190   : > { %3424 = vtanh.f32 %v659_v47  ;;  %v748_v53 = vadd.f32 %v747_v49, %v3952_v45  ;;  %v749_v39 = vpop.f32.mrb[5].mxu1 }
 0x191   : > { %3426 = vtanh.f32 %v661_v50  ;;  %v750_v55 = vadd.f32 %v749_v39, %v3952_v45  ;;  %v664_v15 = vpop.f32.mrb[6].mxu0 }
 0x192   : > { %v3409_v56 = vpop.eup %3408  ;;  %3428 = vtanh.f32 %v748_v53  ;;  %v665_v57 = vadd.f32 %v664_v15, %v3958_v54  ;;  %v666_v14 = vpop.f32.mrb[7].mxu0 }
 0x193   : > { %v3411_v52 = vpop.eup %3410  ;;  %3430 = vtanh.f32 %v750_v55  ;;  %v753_v59 = vpop.f32.mrb[6].mxu1  ;;  %v667_v60 = vadd.f32 %v666_v14, %v3958_v54 }
 0x194   : > { %v3413_v51 = vpop.eup %3412  ;;  %3432 = vtanh.f32 %v665_v57  ;;  %v754_v30 = vadd.f32 %v753_v59, %v3958_v54  ;;  %v755_v28 = vpop.f32.mrb[7].mxu1 }
 0x195   : > { %v3415_v61 = vpop.eup %3414  ;;  %3434 = vtanh.f32 %v667_v60  ;;  %v756_v62 = vadd.f32 %v755_v28, %v3958_v54  ;;  %v824_v63 = vpop.f32.mrb[8].mxu0  ;;  %v968_v28 = vld [vmem:[%s4899_s5] sm:$0x1] }
 0x196   : > { %v3417_v0 = vpop.eup %3416  ;;  %3436 = vtanh.f32 %v754_v30  ;;  %v825_v3 = vadd.f32 %v824_v63, %v3941_v20  ;;  %v826_v4 = vpop.f32.mrb[9].mxu0 }
 0x197   : > { %v3419_v6 = vpop.eup %3418  ;;  %3438 = vtanh.f32 %v756_v62  ;;  %v913_v8 = vpop.f32.mrb[8].mxu1  ;;  %v827_v9 = vadd.f32 %v826_v4, %v3941_v20  ;;  %v3224_v11 = vpack.c.bf16 %v3417_v0, %v3409_v56 }
 0x198   : > { %v3421_v12 = vpop.eup %3420  ;;  %3440 = vtanh.f32 %v825_v3  ;;  %v914_v13 = vadd.f32 %v913_v8, %v3941_v20  ;;  %v915_v16 = vpop.f32.mrb[9].mxu1  ;;  %v3222_v17 = vpack.c.bf16 %v3419_v6, %v3411_v52 }
 0x199   : > { %v3423_v58 = vpop.eup %3422  ;;  %3442 = vtanh.f32 %v827_v9  ;;  %v916_v18 = vadd.f32 %v915_v16, %v3941_v20  ;;  %v830_v19 = vpop.f32.mrb[10].mxu0  ;;  %v3232_v2 = vpack.c.bf16 %v3421_v12, %v3413_v51 }
 0x19a   : > { %v3425_v21 = vpop.eup %3424  ;;  %3444 = vtanh.f32 %v914_v13  ;;  %v831_v23 = vadd.f32 %v830_v19, %v3946_v5  ;;  %v832_v24 = vpop.f32.mrb[11].mxu0  ;;  %3223 = vmatprep.subr.bf16.mxu0 %v3222_v17  ;;  %v3230_v26 = vpack.c.bf16 %v3423_v58, %v3415_v61 }
 0x19b   : > { %v3427_v32 = vpop.eup %3426  ;;  %3446 = vtanh.f32 %v916_v18  ;;  %v919_v34 = vpop.f32.mrb[10].mxu1  ;;  %v833_v36 = vadd.f32 %v832_v24, %v3946_v5  ;;  %3225 = vmatpush1.bf16.msra.mxu0 %v3224_v11 }
 0x19c   : > { %v3429_v37 = vpop.eup %3428  ;;  %3448 = vtanh.f32 %v831_v23  ;;  %v920_v38 = vadd.f32 %v919_v34, %v3946_v5  ;;  %v921_v20 = vpop.f32.mrb[11].mxu1  ;;  %3231 = vmatprep.subr.bf16.mxu1 %v3230_v26 }
 0x19d   : > { %v3431_v41 = vpop.eup %3430  ;;  %3450 = vtanh.f32 %v833_v36  ;;  %v922_v1 = vadd.f32 %v921_v20, %v3946_v5  ;;  %3233 = vmatpush1.bf16.msra.mxu1 %v3232_v2  ;;  %v836_v22 = vpop.f32.mrb[12].mxu0 }
 0x19e   : > { %v3433_v42 = vpop.eup %3432  ;;  %3452 = vtanh.f32 %v920_v38  ;;  %v837_v43 = vadd.f32 %v836_v22, %v3952_v45  ;;  %v838_v44 = vpop.f32.mrb[13].mxu0 }
 0x19f   : > { %v3435_v46 = vpop.eup %3434  ;;  %3454 = vtanh.f32 %v922_v1  ;;  %v925_v35 = vpop.f32.mrb[12].mxu1  ;;  %v839_v47 = vadd.f32 %v838_v44, %v3952_v45  ;;  %v3228_v48 = vpack.c.bf16 %v3433_v42, %v3425_v21 }
 0x1a0   : > { %v3437_v49 = vpop.eup %3436  ;;  %3456 = vtanh.f32 %v837_v43  ;;  %v926_v50 = vadd.f32 %v925_v35, %v3952_v45  ;;  %v927_v53 = vpop.f32.mrb[13].mxu1  ;;  %v3226_v39 = vpack.c.bf16 %v3435_v46, %v3427_v32 }
 0x1a1   : > { %v3439_v5 = vpop.eup %3438  ;;  %3458 = vtanh.f32 %v839_v47  ;;  %v928_v55 = vadd.f32 %v927_v53, %v3952_v45  ;;  %v842_v15 = vpop.f32.mrb[14].mxu0  ;;  %v3236_v56 = vpack.c.bf16 %v3437_v49, %v3429_v37 }
 0x1a2   : > { %v3441_v57 = vpop.eup %3440  ;;  %3460 = vtanh.f32 %v926_v50  ;;  %v843_v14 = vadd.f32 %v842_v15, %v3958_v54  ;;  %v844_v52 = vpop.f32.mrb[15].mxu0  ;;  %3227 = vmatprep.subr.bf16.mxu0 %v3226_v39  ;;  %v3234_v59 = vpack.c.bf16 %v3439_v5, %v3431_v41 }
 0x1a3   : > { %v3443_v60 = vpop.eup %3442  ;;  %3462 = vtanh.f32 %v928_v55  ;;  %v931_v51 = vpop.f32.mrb[14].mxu1  ;;  %v845_v30 = vadd.f32 %v844_v52, %v3958_v54  ;;  %3229 = vmatpush1.bf16.msra.mxu0 %v3228_v48 }
 0x1a4   : > { %v3445_v45 = vpop.eup %3444  ;;  %3464 = vtanh.f32 %v843_v14  ;;  %v932_v61 = vadd.f32 %v931_v51, %v3958_v54  ;;  %v933_v62 = vpop.f32.mrb[15].mxu1  ;;  %3235 = vmatprep.subr.bf16.mxu1 %v3234_v59 }
 0x1a5   : > { %v3447_v63 = vpop.eup %3446  ;;  %3466 = vtanh.f32 %v845_v30  ;;  %v934_v0 = vadd.f32 %v933_v62, %v3958_v54  ;;  %3237 = vmatpush1.bf16.msra.mxu1 %v3236_v56 }
 0x1a6   : > { %v3449_v3 = vpop.eup %3448  ;;  %3468 = vtanh.f32 %v932_v61  ;;  %3116 = vmatmul.mubr.msk.f32.vlgmr.msra.gmra.mrb[16].mxu0 %vm567_vm13, %v968_v28 }
 0x1a7   : > { %v3451_v4 = vpop.eup %3450  ;;  %3470 = vtanh.f32 %v934_v0  ;;  %v3240_v6 = vpack.c.bf16 %v3449_v3, %v3441_v57  ;;  %1178 = vmatprep.mubr.f32.mxu0 %v3607_v7 }
 0x1a8   : > { %v3453_v8 = vpop.eup %3452  ;;  %3117 = vmatmul.mubr.msk.f32.vlgmr.msra.gmra.mrb[16].mxu1 %vm567_vm13, %v968_v28  ;;  %v3238_v9 = vpack.c.bf16 %v3451_v4, %v3443_v60 }
 0x1a9   : > { %v3455_v11 = vpop.eup %3454  ;;  %v3248_v12 = vpack.c.bf16 %v3453_v8, %v3445_v45  ;;  %1249 = vmatprep.mubr.f32.mxu1 %v3607_v7 }
 0x1aa   : > { %v3457_v13 = vpop.eup %3456  ;;  %3239 = vmatprep.subr.bf16.mxu0 %v3238_v9  ;;  %v3246_v54 = vpack.c.bf16 %v3455_v11, %v3447_v63 }
 0x1ab   : > { %v3459_v16 = vpop.eup %3458  ;;  %3241 = vmatpush1.bf16.msra.mxu0 %v3240_v6 }
 0x1ac   : > { %v3461_v17 = vpop.eup %3460  ;;  %3247 = vmatprep.subr.bf16.mxu1 %v3246_v54 }
 0x1ad   : > { %v3463_v58 = vpop.eup %3462  ;;  %3249 = vmatpush1.bf16.msra.mxu1 %v3248_v12 }
 0x1ae   : > { %v3465_v18 = vpop.eup %3464 }
 0x1af   : > { %v3467_v19 = vpop.eup %3466  ;;  %v3244_v2 = vpack.c.bf16 %v3465_v18, %v3457_v13 }
 0x1b0   : > { %v3469_v21 = vpop.eup %3468  ;;  %v3242_v23 = vpack.c.bf16 %v3467_v19, %v3459_v16 }
 0x1b1   : > { %v3471_v24 = vpop.eup %3470  ;;  %v3252_v26 = vpack.c.bf16 %v3469_v21, %v3461_v17 }
 0x1b2   : > { %3243 = vmatprep.subr.bf16.mxu0 %v3242_v23  ;;  %v3250_v32 = vpack.c.bf16 %v3471_v24, %v3463_v58 }
 0x1b3   : > { %3245 = vmatpush1.bf16.msra.mxu0 %v3244_v2 }
 0x1b4   : > { %3251 = vmatprep.subr.bf16.mxu1 %v3250_v32 }
 0x1b5   : > { %3253 = vmatpush1.bf16.msra.mxu1 %v3252_v26 }
 0x1b6   : > { %3118 = vmatmul.mubr.msk.f32.vlgmr.msra.gmra.mrb[18].mxu0 %vm567_vm13, %v968_v28 }
 0x1b8   : > { %3119 = vmatmul.mubr.msk.f32.vlgmr.msra.gmra.mrb[18].mxu1 %vm567_vm13, %v968_v28 }
 0x279   : > { %v1038_v7 = vpop.f32.mrb[16].mxu0 }
 0x27a   : > { %v1039_v34 = vadd.f32 1.0, %v1038_v7  ;;  %v1040_v36 = vpop.f32.mrb[17].mxu0 }
 0x27b   : > { %v1109_v37 = vpop.f32.mrb[16].mxu1  ;;  %v1041_v21 = vadd.f32 1.0, %v1040_v36 }
 0x27c   : > { %v1256_v38 = vmul.f32 0.25, %v1039_v34  ;;  %v3990_v20 = vpop.f32.mrb[17].mxu1  ;;  %v1110_v22 = vadd.f32 1.0, %v1109_v37 }
 0x27e   : > { %v1264_v41 = vadd.f32 0.3, %v1256_v38  ;;  %v1258_v44 = vmul.f32 0.25, %v1110_v22 }
 0x280   : > { %v3992_v1 = vsub.f32 0.7853982, %v1264_v41  ;;  %v1266_v47 = vadd.f32 0.3, %v1258_v44 }
 0x282   : > { %v1283_v42 = vand.u32 2139095040, %v3992_v1  ;;  %v1280_v48 = vand.u32 2147483647, %v3992_v1  ;;  %v4002_v55 = vsub.f32 0.7853982, %v1266_v47  ;;  %vm1282_vm11 = vcmp.lt.s32.totalorder %v3992_v1, 0 }
 0x284   : > { %v1284_v43 = vshrl.u32 %v1283_v42, 23  ;;  %v1287_v15 = vand.u32 8388607, %v1280_v48  ;;  %v1491_v61 = vand.u32 2139095040, %v4002_v55  ;;  %vm1281_vm12 = vcmp.le.f32.partialorder %v1280_v48, 0.7853982 }
 0x286   : > { %v3120_v46 = vadd.s32 4294967169, %v1284_v43  ;;  %v1288_v0 = vor.u32 8388608, %v1287_v15  ;;  %v1492_v58 = vshrl.u32 %v1491_v61, 23  ;;  %v1257_v43 = vmul.f32 0.25, %v1041_v21 }
 0x288   : > { %v1290_v35 = vadd.s32 1, %v3120_v46  ;;  %v1328_v2 = vshll.u32 %v1288_v0, 8  ;;  %v3128_v22 = vadd.s32 4294967169, %v1492_v58 }
 0x289   : > { %v3996_v49 = vpop.f32.mrb[18].mxu0 }
 0x28a   : > { %vm1291_vm14 = vcmp.gt.s32.totalorder %v1290_v35, 0  ;;  %v3998_v50 = vpop.f32.mrb[19].mxu0  ;;  %v1498_v46 = vadd.s32 1, %v3128_v22 }
 0x28b   : > { %v1292_v53 = vsel %vm1291_vm14, %v1290_v35, 0  ;;  %v4000_v39 = vpop.f32.mrb[18].mxu1  ;;  %vm1372_vm14 = vweird.f32 %v3992_v1 }
 0x28c   : > { %v1294_v5 = vand.u32 31, %v1292_v53  ;;  %v1293_v56 = vshrl.u32 %v1292_v53, 5  ;;  %v4020_v23 = vpop.f32.mrb[19].mxu1  ;;  %v1265_v53 = vadd.f32 0.3, %v1257_v43  ;;  %vm1499_vm4 = vcmp.gt.s32.totalorder %v1498_v46, 0 }
 0x28e   : > { %v1295_v57 = vsub.s32 32, %v1294_v5  ;;  %v1297_v14 = vshll.u32 %v3601_v25, %v1294_v5  ;;  %v1300_v52 = vshll.u32 %v4910_v27, %v1294_v5  ;;  %v1303_v59 = vshll.u32 %v4908_v29, %v1294_v5 }
 0x28f   : > { %v1306_v60 = vshll.u32 %v4906_v31, %v1294_v5  ;;  %v1309_v51 = vshll.u32 %v3605_v33, %v1294_v5  ;;  %vm1312_vm15 = vcmp.lt.s32.totalorder %v1293_v56, 1  ;;  %vm1315_vm0 = vcmp.lt.s32.totalorder %v1293_v56, 4 }
 0x290   : > { %v1298_v30 = vshrl.u32 %v4910_v27, %v1295_v57  ;;  %v1301_v28 = vshrl.u32 %v4908_v29, %v1295_v57  ;;  %v1304_v45 = vshrl.u32 %v4906_v31, %v1295_v57  ;;  %v1307_v62 = vshrl.u32 %v3605_v33, %v1295_v57 }
 0x291   : > { %v1310_v63 = vshrl.u32 %v3606_v40, %v1295_v57  ;;  %v1296_v8 = vshrl.u32 %v3601_v25, %v1295_v57  ;;  %vm1314_vm1 = vcmp.lt.s32.totalorder %v1293_v56, 3  ;;  %vm1313_vm2 = vcmp.lt.s32.totalorder %v1293_v56, 2 }
 0x292   : > { %v1299_v3 = vor.u32 %v1298_v30, %v1297_v14  ;;  %v1302_v4 = vor.u32 %v1301_v28, %v1300_v52  ;;  %v1305_v6 = vor.u32 %v1304_v45, %v1303_v59  ;;  %v1308_v9 = vor.u32 %v1307_v62, %v1306_v60 }
 0x293   : > { %v1311_v11 = vor.u32 %v1310_v63, %v1309_v51  ;;  %v1500_v57 = vsel %vm1499_vm4, %v1498_v46, 0  ;;  %v4037_v14 = vsub.f32 0.7853982, %v1265_v53  ;;  %v1112_v30 = vadd.f32 1.0, %v3990_v20 }
 0x294   : > { %v1317_v12 = vsel %vm1315_vm0, %v1305_v6, 2102212464  ;;  %v1320_v13 = vsel %vm1312_vm15, %v1299_v3, %v1302_v4  ;;  %v1324_v54 = vsel %vm1312_vm15, %v1302_v4, %v1305_v6  ;;  %v1321_v16 = vsel %vm1315_vm0, %v1308_v9, 920167782 }
 0x295   : > { %v1325_v17 = vsel %vm1315_vm0, %v1311_v11, 1326507024  ;;  %v1322_v18 = vsel %vm1314_vm1, %v1305_v6, %v1321_v16  ;;  %v1316_v24 = vsel %vm1312_vm15, %v1296_v8, %v1299_v3  ;;  %v1318_v26 = vsel %vm1314_vm1, %v1302_v4, %v1317_v12 }
 0x296   : > { %v1326_v19 = vsel %vm1314_vm1, %v1308_v9, %v1325_v17  ;;  %v1323_v32 = vsel %vm1313_vm2, %v1320_v13, %v1322_v18  ;;  %v1319_v42 = vsel %vm1313_vm2, %v1316_v24, %v1318_v26  ;;  %v1502_v59 = vand.u32 31, %v1500_v57 }
 0x297   : > { %v1327_v7 = vsel %vm1313_vm2, %v1324_v54, %v1326_v19  ;;  %v4028_v38 = vmul.u32.u64.low %v1328_v2, %v1323_v32  ;;  %v4029_v41 = vmul.u32.u64.high %v1328_v2, %v1323_v32, %v4028_v38  ;;  %v1335_v44 = vmul.u32 %v1328_v2, %v1319_v42 }
 0x298   : > { %v4025_v34 = vmul.u32.u64.low %v1328_v2, %v1327_v7  ;;  %v4026_v37 = vmul.u32.u64.high %v1328_v2, %v1327_v7, %v4025_v34  ;;  %v1387_v60 = vand.u32 2139095040, %v4037_v14  ;;  %v1503_v45 = vsub.s32 32, %v1502_v59 }
 0x299   : > { %v1338_v36 = vadd.s32 1, %v4029_v41  ;;  %v1259_v63 = vmul.f32 0.25, %v1112_v30  ;;  %v1488_v3 = vand.u32 2147483647, %v4002_v55  ;;  %v1514_v4 = vshll.u32 %v4906_v31, %v1502_v59 }
 0x29a   : > { %vm1337_vm3 = vc.u32 %v4026_v37, %v4028_v38  ;;  %v1388_v61 = vshrl.u32 %v1387_v60, 23  ;;  %v1515_v6 = vshrl.u32 %v3605_v33, %v1503_v45  ;;  %v4045_v8 = vshrl.u32 %v1500_v57, 5 }
 0x29b   : > { %v1339_v35 = vsel %vm1337_vm3, %v1338_v36, %v4029_v41  ;;  %v1517_v9 = vshll.u32 %v3605_v33, %v1502_v59  ;;  %v1518_v11 = vshrl.u32 %v3606_v40, %v1503_v45  ;;  %v1505_v20 = vshll.u32 %v3601_v25, %v1502_v59 }
 0x29c   : > { %v1340_v47 = vadd.s32 %v1339_v35, %v1335_v44  ;;  %v3124_v12 = vadd.s32 4294967169, %v1388_v61  ;;  %v1506_v13 = vshrl.u32 %v4910_v27, %v1503_v45  ;;  %v1508_v54 = vshll.u32 %v4910_v27, %v1502_v59 }
 0x29d   : > { %v1509_v17 = vshrl.u32 %v4908_v29, %v1503_v45  ;;  %v1511_v58 = vshll.u32 %v4908_v29, %v1502_v59  ;;  %v1512_v18 = vshrl.u32 %v4906_v31, %v1503_v45  ;;  %v1336_v19 = vadd.s32 %v4028_v38, %v4026_v37 }
 0x29e   : > { %v1341_v5 = vadd.s32 536870912, %v1340_v47  ;;  %v1516_v24 = vor.u32 %v1515_v6, %v1514_v4  ;;  %v1495_v26 = vand.u32 8388607, %v1488_v3  ;;  %v1519_v32 = vor.u32 %v1518_v11, %v1517_v9 }
 0x29f   : > { %vm1523_vm6 = vcmp.lt.s32.totalorder %v4045_v8, 4  ;;  %v1267_v7 = vadd.f32 0.3, %v1259_v63  ;;  %v1394_v42 = vadd.s32 1, %v3124_v12  ;;  %v1507_v36 = vor.u32 %v1506_v13, %v1505_v20 }
 0x2a0   : > { %v4035_v15 = vshrl.u32 %v1341_v5, 30  ;;  %v1510_v43 = vor.u32 %v1509_v17, %v1508_v54  ;;  %v1513_v44 = vor.u32 %v1512_v18, %v1511_v58  ;;  %vm1520_vm7 = vcmp.lt.s32.totalorder %v4045_v8, 1 }
 0x2a1   : > { %vm1522_vm8 = vcmp.lt.s32.totalorder %v4045_v8, 3  ;;  %v1529_v46 = vsel %vm1523_vm6, %v1516_v24, 920167782  ;;  %v1533_v35 = vsel %vm1523_vm6, %v1519_v32, 1326507024  ;;  %v1496_v53 = vor.u32 8388608, %v1495_v26 }
 0x2a2   : > { %v1343_v56 = vshll.u32 %v4035_v15, 30  ;;  %v4065_v5 = vsub.f32 0.7853982, %v1267_v7  ;;  %vm1521_vm9 = vcmp.lt.s32.totalorder %v4045_v8, 2  ;;  %v1528_v57 = vsel %vm1520_vm7, %v1507_v36, %v1510_v43 }
 0x2a3   : > { %vm1395_vm10 = vcmp.gt.s32.totalorder %v1394_v42, 0  ;;  %v1532_v60 = vsel %vm1520_vm7, %v1510_v43, %v1513_v44  ;;  %v4905_v4 = vand.u32 2147483647, %v4037_v14  ;;  %v1504_v9 = vshrl.u32 %v3601_v25, %v1503_v45 }
 0x2a4   : > { %v1344_v52 = vsub.s32 %v1340_v47, %v1343_v56  ;;  %v1530_v56 = vsel %vm1522_vm8, %v1513_v44, %v1529_v46  ;;  %v1595_v11 = vand.u32 2139095040, %v4065_v5  ;;  %v1525_v12 = vsel %vm1523_vm6, %v1513_v44, 2102212464 }
 0x2a5   : > { %v1531_v61 = vsel %vm1521_vm9, %v1528_v57, %v1530_v56  ;;  %v4104_v18 = vand.u32 8388607, %v4905_v4  ;;  %v1181_v7 = vadd.f32 1.0, %v3996_v49 }
 0x2a6   : > { %v1346_v51 = vsub.s32 0, %v1344_v52 }
 0x2a7   : > { %v1392_v26 = vor.u32 8388608, %v4104_v18  ;;  %v1252_v18 = vadd.f32 1.0, %v4000_v39 }
 0x2a8   : > { %v3121_v28 = vmin.u32 %v1346_v51, %v1344_v52  ;;  %v1534_v51 = vsel %vm1522_vm8, %v1516_v24, %v1533_v35 }
 0x2a9   : > { %v1535_v63 = vsel %vm1521_vm9, %v1532_v60, %v1534_v51 }
 0x2aa   : > { %v1348_v62 = vclz %v3121_v28  ;;  %v1366_v28 = vsub.s32 4, %v4035_v15 }
 0x2ac   : > { %v3122_v0 = vadd.s32 4294967294, %v1348_v62  ;;  %v1396_v62 = vsel %vm1395_vm10, %v1394_v42, 0  ;;  %v1367_v17 = vsel %vm1282_vm11, %v1366_v28, %v4035_v15  ;;  %v1526_v15 = vsel %vm1522_vm8, %v1510_v43, %v1525_v12 }
 0x2ad   : > { %v1398_v54 = vand.u32 31, %v1396_v62  ;;  %v4113_v32 = vshrl.u32 %v1396_v62, 5 }
 0x2ae   : > { %vm3123_vm5 = vcmp.lt.s32.totalorder %v3122_v0, 0 }
 0x2af   : > { %v1351_v16 = vsel %vm3123_vm5, 0, %v3122_v0  ;;  %v4082_v0 = vshll.u32 %v1496_v53, 8  ;;  %v4110_v24 = vsub.s32 32, %v1398_v54  ;;  %v1404_v44 = vshll.u32 %v4910_v27, %v1398_v54 }
 0x2b0   : > { %v1352_v2 = vsub.s32 32, %v1351_v16  ;;  %v1356_v21 = vsub.s32 4294967266, %v1351_v16  ;;  %v1353_v34 = vshll.u32 %v1344_v52, %v1351_v16  ;;  %v1410_v43 = vshll.u32 %v4906_v31, %v1398_v54 }
 0x2b1   : > { %v4092_v20 = vmul.u32.u64.low %v4082_v0, %v1531_v61  ;;  %v4093_v13 = vmul.u32.u64.high %v4082_v0, %v1531_v61, %v4092_v20  ;;  %v4098_v58 = vmul.u32.u64.low %v4082_v0, %v1535_v63  ;;  %v4099_v48 = vmul.u32.u64.high %v4082_v0, %v1535_v63, %v4098_v58 }
 0x2b2   : > { %v1354_v41 = vshrl.u32 %v1336_v19, %v1352_v2  ;;  %v1357_v22 = vadd.s32 127, %v1356_v21  ;;  %v1524_v19 = vsel %vm1520_vm7, %v1504_v9, %v1507_v36  ;;  %v1596_v2 = vshrl.u32 %v1595_v11, 23 }
 0x2b3   : > { %v1369_v21 = vsel %vm1281_vm12, 0, %v1367_v17  ;;  %v1546_v36 = vadd.s32 1, %v4093_v13  ;;  %vm1545_vm13 = vc.u32 %v4099_v48, %v4092_v20  ;;  %v1402_v49 = vshrl.u32 %v4910_v27, %v4110_v24 }
 0x2b4   : > { %v1355_v37 = vor.u32 %v1354_v41, %v1353_v34  ;;  %v1358_v38 = vshll.u32 %v1357_v22, 23  ;;  %v1373_v34 = vadd.s32 3, %v1369_v21  ;;  %v1527_v41 = vsel %vm1521_vm9, %v1524_v19, %v1526_v15 }
 0x2b5   : > { %v1401_v22 = vshll.u32 %v3601_v25, %v1398_v54  ;;  %v3132_v42 = vadd.s32 4294967169, %v1596_v2  ;;  %v1407_v8 = vshll.u32 %v4908_v29, %v1398_v54  ;;  %v1405_v46 = vshrl.u32 %v4908_v29, %v4110_v24 }
 0x2b6   : > { %v1359_v47 = vor.u32 4788187, %v1358_v38  ;;  %v1362_v59 = vcvt.s32.f32 %v1355_v37  ;;  %v1411_v37 = vshrl.u32 %v3605_v33, %v4110_v24  ;;  %v2205_v38 = vand.u32 3, %v1369_v21 }
 0x2b7   : > { %v1408_v35 = vshrl.u32 %v4906_v31, %v4110_v24  ;;  %v1414_v53 = vshrl.u32 %v3606_v40, %v4110_v24  ;;  %v1374_v57 = vand.u32 3, %v1373_v34  ;;  %v1543_v56 = vmul.u32 %v4082_v0, %v1527_v41 }
 0x2b8   : > { %v1360_v52 = vand.u32 2147483647, %v1359_v47  ;;  %v1413_v47 = vshll.u32 %v3605_v33, %v1398_v54  ;;  %vm1416_vm15 = vcmp.lt.s32.totalorder %v4113_v32, 1  ;;  %vm1417_vm0 = vcmp.lt.s32.totalorder %v4113_v32, 2 }
 0x2b9   : > { %vm1418_vm1 = vcmp.lt.s32.totalorder %v4113_v32, 3  ;;  %vm1419_vm2 = vcmp.lt.s32.totalorder %v4113_v32, 4  ;;  %vm2207_vm3 = vcmp.eq.s32.totalorder %v2205_v38, 0  ;;  %vm2210_vm4 = vcmp.eq.s32.totalorder %v2205_v38, 2 }
 0x2ba   : > { %v1363_v30 = vmul.f32 %v1362_v59, %v1360_v52  ;;  %v1602_v52 = vadd.s32 1, %v3132_v42  ;;  %v1412_v59 = vor.u32 %v1411_v37, %v1410_v43  ;;  %v1547_v51 = vsel %vm1545_vm13, %v1546_v36, %v4093_v13 }
 0x2bb   : > { %v1406_v62 = vor.u32 %v1405_v46, %v1404_v44  ;;  %v1409_v63 = vor.u32 %v1408_v35, %v1407_v8  ;;  %v1415_v0 = vor.u32 %v1414_v53, %v1413_v47  ;;  %vm1376_vm5 = vcmp.eq.s32.totalorder %v1374_v57, 0 }
 0x2bc   : > { %v1364_v6 = vxor.u32 2147483648, %v1363_v30  ;;  %vm1379_vm6 = vcmp.eq.s32.totalorder %v1374_v57, 2  ;;  %vm1603_vm7 = vcmp.gt.s32.totalorder %v1602_v52, 0  ;;  %v1425_v12 = vsel %vm1419_vm2, %v1412_v59, 920167782 }
 0x2bd   : > { %v1260_v54 = vmul.f32 0.25, %v1181_v7  ;;  %vm1375_vm8 = vcmp.lt.s32.totalorder %v1374_v57, 2  ;;  %vm2206_vm9 = vcmp.lt.s32.totalorder %v2205_v38, 2  ;;  %v1604_v19 = vsel %vm1603_vm7, %v1602_v52, 0 }
 0x2be   : > { %v1365_v16 = vsel %vm1282_vm11, %v1364_v6, %v1363_v30  ;;  %v1403_v30 = vor.u32 %v1402_v49, %v1401_v22  ;;  %v1426_v7 = vsel %vm1418_vm1, %v1409_v63, %v1425_v12  ;;  %v1548_v34 = vadd.s32 %v1547_v51, %v1543_v56 }
 0x2bf   : > { %v1368_v45 = vsel %vm1281_vm12, %v3992_v1, %v1365_v16  ;;  %v1268_v41 = vadd.f32 0.3, %v1260_v54  ;;  %v1428_v22 = vsel %vm1416_vm15, %v1406_v62, %v1409_v63  ;;  %v1606_v36 = vand.u32 31, %v1604_v19 }
 0x2c0   : > { %3472 = vcosq.f32 %v1368_v45  ;;  %v1424_v15 = vsel %vm1416_vm15, %v1403_v30, %v1406_v62  ;;  %v1432_v44 = vshll.u32 %v1392_v26, 8  ;;  %v1549_v43 = vadd.s32 536870912, %v1548_v34 }
 0x2c1   : > { %3474 = vsinq.f32 %v1368_v45  ;;  %v1429_v45 = vsel %vm1419_vm2, %v1415_v0, 1326507024  ;;  %v1427_v1 = vsel %vm1417_vm0, %v1424_v15, %v1426_v7  ;;  %v4169_v38 = vsub.f32 0.7853982, %v1268_v41 }
 0x2c2   : > { %v1430_v42 = vsel %vm1418_vm1, %v1412_v59, %v1429_v45  ;;  %v1400_v49 = vshrl.u32 %v3601_v25, %v4110_v24  ;;  %v4173_v8 = vmul.u32.u64.low %v1432_v44, %v1427_v1  ;;  %v4174_v46 = vmul.u32.u64.high %v1432_v44, %v1427_v1, %v4173_v8 }
 0x2c3   : > { %v1431_v37 = vsel %vm1417_vm0, %v1428_v22, %v1430_v42  ;;  %v4177_v35 = vsub.s32 32, %v1606_v36  ;;  %v1421_v47 = vsel %vm1419_vm2, %v1409_v63, 2102212464  ;;  %v4185_v57 = vshrl.u32 %v1549_v43, 30 }
 0x2c4   : > { %v4182_v26 = vmul.u32.u64.low %v1432_v44, %v1431_v37  ;;  %v4183_v53 = vmul.u32.u64.high %v1432_v44, %v1431_v37, %v4182_v26  ;;  %v4904_v56 = vand.u32 2147483647, %v4065_v5  ;;  %v1699_v24 = vand.u32 2139095040, %v4169_v38 }
 0x2c5   : > { %v1420_v52 = vsel %vm1416_vm15, %v1400_v49, %v1403_v30  ;;  %v1422_v59 = vsel %vm1418_vm1, %v1406_v62, %v1421_v47  ;;  %v1619_v39 = vshrl.u32 %v3605_v33, %v4177_v35  ;;  %v1622_v63 = vshrl.u32 %v3606_v40, %v4177_v35 }
 0x2c6   : > { %v1262_v0 = vmul.f32 0.25, %v1252_v18  ;;  %v1609_v30 = vshll.u32 %v3601_v25, %v1606_v36  ;;  %v1612_v62 = vshll.u32 %v4910_v27, %v1606_v36  ;;  %v1613_v12 = vshrl.u32 %v4908_v29, %v4177_v35 }
 0x2c7   : > { %v1616_v54 = vshrl.u32 %v4906_v31, %v4177_v35  ;;  %vm1441_vm11 = vc.u32 %v4183_v53, %v4173_v8  ;;  %v1599_v15 = vand.u32 8388607, %v4904_v56 }
 0x2c8   : > { %v1614_v41 = vor.u32 %v1613_v12, %v1612_v62 }
 0x2c9   : > { %v1600_v18 = vor.u32 8388608, %v1599_v15 }
 0x2ca   : > { %v3473_v60 = vpop.eup %3472 }
 0x2cb   : > { %v3475_v28 = vpop.eup %3474  ;;  %v1380_v61 = vxor.u32 2147483648, %v3473_v60 }
 0x2cc   : > { %v1377_v6 = vxor.u32 2147483648, %v3475_v28 }
 0x2cd   : > { %v1381_v9 = vsel %vm1379_vm6, %v1380_v61, %v3475_v28  ;;  %v2212_v11 = vsel %vm2210_vm4, %v1380_v61, %v3475_v28  ;;  %v4196_v28 = vshrl.u32 %v1604_v19, 5  ;;  %v1621_v61 = vshll.u32 %v3605_v33, %v1606_v36 }
 0x2ce   : > { %v1378_v16 = vsel %vm1376_vm5, %v3473_v60, %v1377_v6  ;;  %v2209_v13 = vsel %vm2207_vm3, %v3473_v60, %v1377_v6  ;;  %v1618_v60 = vshll.u32 %v4906_v31, %v1606_v36  ;;  %v1270_v19 = vadd.f32 0.3, %v1262_v0 }
 0x2cf   : > { %v1382_v17 = vsel %vm1375_vm8, %v1378_v16, %v1381_v9  ;;  %v2213_v58 = vsel %vm2206_vm9, %v2209_v13, %v2212_v11  ;;  %v1615_v9 = vshll.u32 %v4908_v29, %v1606_v36  ;;  %v1610_v11 = vshrl.u32 %v4910_v27, %v4177_v35 }
 0x2d0   : > { %v1383_v2 = vsel %vm1372_vm14, nan, %v1382_v17  ;;  %v2214_v21 = vsel %vm1372_vm14, nan, %v2213_v58  ;;  %v1700_v16 = vshrl.u32 %v1699_v24, 23  ;;  %v1442_v13 = vadd.s32 1, %v4174_v46 }
 0x2d1   : > { %3476 = vrcp.f32 %v2214_v21  ;;  %v1620_v17 = vor.u32 %v1619_v39, %v1618_v60  ;;  %v1623_v58 = vor.u32 %v1622_v63, %v1621_v61  ;;  %vm1627_vm10 = vcmp.lt.s32.totalorder %v4196_v28, 4 }
 0x2d2   : > { %v3136_v45 = vadd.s32 4294967169, %v1700_v16  ;;  %v1423_v21 = vsel %vm1417_vm0, %v1420_v52, %v1422_v59  ;;  %v1611_v7 = vor.u32 %v1610_v11, %v1609_v30  ;;  %v1617_v22 = vor.u32 %v1616_v54, %v1615_v9 }
 0x2d3   : > { %vm1624_vm12 = vcmp.lt.s32.totalorder %v4196_v28, 1  ;;  %vm1626_vm13 = vcmp.lt.s32.totalorder %v4196_v28, 3  ;;  %v1633_v36 = vsel %vm1627_vm10, %v1620_v17, 920167782  ;;  %v1443_v32 = vsel %vm1441_vm11, %v1442_v13, %v4174_v46 }
 0x2d4   : > { %v1706_v42 = vadd.s32 1, %v3136_v45  ;;  %v1637_v1 = vsel %vm1627_vm10, %v1623_v58, 1326507024  ;;  %v4228_v43 = vsub.f32 0.7853982, %v1270_v19  ;;  %v1439_v49 = vmul.u32 %v1432_v44, %v1423_v21 }
 0x2d5   : > { %vm1625_vm15 = vcmp.lt.s32.totalorder %v4196_v28, 2  ;;  %v1632_v26 = vsel %vm1624_vm12, %v1611_v7, %v1614_v41  ;;  %v1634_v24 = vsel %vm1626_vm13, %v1617_v22, %v1633_v36  ;;  %v1636_v52 = vsel %vm1624_vm12, %v1614_v41, %v1617_v22 }
 0x2d6   : > { %vm1707_vm14 = vcmp.gt.s32.totalorder %v1706_v42, 0  ;;  %v4237_v46 = vadd.s32 %v1443_v32, %v1439_v49  ;;  %v1907_v44 = vand.u32 2139095040, %v4228_v43  ;;  %v1635_v60 = vsel %vm1625_vm15, %v1632_v26, %v1634_v24 }
 0x2d7   : > { %v1708_v47 = vsel %vm1707_vm14, %v1706_v42, 0  ;;  %v1640_v61 = vshll.u32 %v1600_v18, 8  ;;  %v4903_v9 = vand.u32 2147483647, %v4169_v38  ;;  %v1608_v13 = vshrl.u32 %v3601_v25, %v4177_v35 }
 0x2d8   : > { %v1710_v59 = vand.u32 31, %v1708_v47  ;;  %v1445_v63 = vadd.s32 536870912, %v4237_v46  ;;  %v1908_v11 = vshrl.u32 %v1907_v44, 23  ;;  %v1709_v26 = vshrl.u32 %v1708_v47, 5 }
 0x2d9   : > { %v4250_v30 = vmul.u32.u64.low %v1640_v61, %v1635_v60  ;;  %v4251_v62 = vmul.u32.u64.high %v1640_v61, %v1635_v60, %v4250_v30  ;;  %v1703_v15 = vand.u32 8388607, %v4903_v9  ;;  %v1628_v49 = vsel %vm1624_vm12, %v1608_v13, %v1611_v7 }
 0x2da   : > { %v1711_v0 = vsub.s32 32, %v1710_v59  ;;  %v4267_v21 = vshrl.u32 %v1445_v63, 30  ;;  %v3144_v36 = vadd.s32 4294967169, %v1908_v11  ;;  %v1713_v35 = vshll.u32 %v3601_v25, %v1710_v59 }
 0x2db   : > { %v3477_v51 = vpop.eup %3476  ;;  %v1719_v32 = vshll.u32 %v4908_v29, %v1710_v59  ;;  %v1725_v24 = vshll.u32 %v3605_v33, %v1710_v59  ;;  %v1704_v11 = vor.u32 8388608, %v1703_v15  ;;  %vm1728_vm1 = vcmp.lt.s32.totalorder %v1709_v26, 1 }
 0x2dc   : > { %v4201_v6 = vmul.f32 %v3477_v51, %v1383_v2  ;;  %v1551_v2 = vshll.u32 %v4185_v57, 30  ;;  %v1714_v58 = vshrl.u32 %v4910_v27, %v1711_v0  ;;  %v1717_v45 = vshrl.u32 %v4908_v29, %v1711_v0 }
 0x2dd   : > { %v1720_v19 = vshrl.u32 %v4906_v31, %v1711_v0  ;;  %v1726_v42 = vshrl.u32 %v3606_v40, %v1711_v0  ;;  %v1447_v7 = vshll.u32 %v4267_v21, 30  ;;  %vm1731_vm2 = vcmp.lt.s32.totalorder %v1709_v26, 4 }
 0x2de   : > { %v4230_v37 = vsub.s32 %v1548_v34, %v1551_v2  ;;  %v1638_v34 = vsel %vm1626_vm13, %v1620_v17, %v1637_v1  ;;  %v1629_v17 = vsel %vm1627_vm10, %v1617_v22, 2102212464  ;;  %v1723_v2 = vshrl.u32 %v3605_v33, %v1711_v0 }
 0x2df   : > { %v1639_v51 = vsel %vm1625_vm15, %v1636_v52, %v1638_v34  ;;  %v1716_v22 = vshll.u32 %v4910_v27, %v1710_v59  ;;  %v1722_v1 = vshll.u32 %v4906_v31, %v1710_v59  ;;  %v1630_v18 = vsel %vm1626_vm13, %v1614_v41, %v1629_v17 }
 0x2e0   : > { %v1554_v39 = vsub.s32 0, %v4230_v37  ;;  %v4255_v12 = vmul.u32.u64.low %v1640_v61, %v1639_v51  ;;  %v4256_v54 = vmul.u32.u64.high %v1640_v61, %v1639_v51, %v4255_v12  ;;  %v1715_v52 = vor.u32 %v1714_v58, %v1713_v35 }
 0x2e1   : > { %v1718_v34 = vor.u32 %v1717_v45, %v1716_v22  ;;  %v1721_v44 = vor.u32 %v1720_v19, %v1719_v32  ;;  %v1724_v60 = vor.u32 %v1723_v2, %v1722_v1  ;;  %v1727_v51 = vor.u32 %v1726_v42, %v1725_v24 }
 0x2e2   : > { %v3129_v16 = vmin.u32 %v1554_v39, %v4230_v37  ;;  %v1650_v39 = vadd.s32 1, %v4251_v62  ;;  %vm1649_vm0 = vc.u32 %v4256_v54, %v4250_v30  ;;  %v1914_v12 = vadd.s32 1, %v3144_v36 }
 0x2e3   : > { %v1631_v41 = vsel %vm1625_vm15, %v1628_v49, %v1630_v18  ;;  %vm1730_vm3 = vcmp.lt.s32.totalorder %v1709_v26, 3  ;;  %v1736_v47 = vsel %vm1728_vm1, %v1715_v52, %v1718_v34  ;;  %v1737_v59 = vsel %vm1731_vm2, %v1724_v60, 920167782 }
 0x2e4   : > { %v1556_v63 = vclz %v3129_v16  ;;  %v1740_v13 = vsel %vm1728_vm1, %v1718_v34, %v1721_v44  ;;  %v1651_v16 = vsel %vm1649_vm0, %v1650_v39, %v4251_v62  ;;  %vm1729_vm4 = vcmp.lt.s32.totalorder %v1709_v26, 2 }
 0x2e5   : > { %v1738_v17 = vsel %vm1730_vm3, %v1721_v44, %v1737_v59  ;;  %v1741_v58 = vsel %vm1731_vm2, %v1727_v51, 1326507024  ;;  %v1744_v19 = vshll.u32 %v1704_v11, 8  ;;  %vm1915_vm5 = vcmp.gt.s32.totalorder %v1914_v12, 0 }
 0x2e6   : > { %v1739_v45 = vsel %vm1729_vm4, %v1736_v47, %v1738_v17  ;;  %v1742_v28 = vsel %vm1730_vm3, %v1724_v60, %v1741_v58  ;;  %v1647_v2 = vmul.u32 %v1640_v61, %v1631_v41  ;;  %v4901_v42 = vand.u32 2147483647, %v4228_v43 }
 0x2e7   : > { %v1743_v15 = vsel %vm1729_vm4, %v1740_v13, %v1742_v28  ;;  %v1916_v36 = vsel %vm1915_vm5, %v1914_v12, 0  ;;  %v4300_v62 = vmul.u32.u64.low %v1744_v19, %v1739_v45  ;;  %v4301_v32 = vmul.u32.u64.high %v1744_v19, %v1739_v45, %v4300_v62 }
 0x2e8   : > { %v4297_v35 = vmul.u32.u64.low %v1744_v19, %v1743_v15  ;;  %v4298_v22 = vmul.u32.u64.high %v1744_v19, %v1743_v15, %v4297_v35  ;;  %v1652_v1 = vadd.s32 %v1651_v16, %v1647_v2  ;;  %v1733_v49 = vsel %vm1731_vm2, %v1721_v44, 2102212464 }
 0x2e9   : > { %v1918_v18 = vand.u32 31, %v1916_v36  ;;  %v1712_v24 = vshrl.u32 %v3601_v25, %v1711_v0  ;;  %v3130_v60 = vadd.s32 4294967294, %v1556_v63  ;;  %v1183_v39 = vadd.f32 1.0, %v3998_v50 }
 0x2ea   : > { %v4308_v51 = vsub.s32 %v4237_v46, %v1447_v7  ;;  %v1734_v12 = vsel %vm1730_vm3, %v1718_v34, %v1733_v49  ;;  %v1911_v41 = vand.u32 8388607, %v4901_v42  ;;  %v1653_v47 = vadd.s32 536870912, %v1652_v1 }
 0x2eb   : > { %v1919_v61 = vsub.s32 32, %v1918_v18  ;;  %v1732_v11 = vsel %vm1728_vm1, %v1712_v24, %v1715_v52  ;;  %v1754_v44 = vadd.s32 1, %v4301_v32  ;;  %v1921_v59 = vshll.u32 %v3601_v25, %v1918_v18 }
 0x2ec   : > { %vm1753_vm6 = vc.u32 %v4298_v22, %v4300_v62  ;;  %v1924_v50 = vshll.u32 %v4910_v27, %v1918_v18  ;;  %v1735_v34 = vsel %vm1729_vm4, %v1732_v11, %v1734_v12  ;;  %v1917_v63 = vshrl.u32 %v1916_v36, 5 }
 0x2ed   : > { %v1922_v0 = vshrl.u32 %v4910_v27, %v1919_v61  ;;  %v1925_v46 = vshrl.u32 %v4908_v29, %v1919_v61  ;;  %v1928_v52 = vshrl.u32 %v4906_v31, %v1919_v61  ;;  %v1927_v7 = vshll.u32 %v4908_v29, %v1918_v18 }
 0x2ee   : > { %v1261_v13 = vmul.f32 0.25, %v1183_v39  ;;  %v1930_v58 = vshll.u32 %v4906_v31, %v1918_v18  ;;  %v1931_v45 = vshrl.u32 %v3605_v33, %v1919_v61  ;;  %v1755_v28 = vsel %vm1753_vm6, %v1754_v44, %v4301_v32 }
 0x2ef   : > { %v1923_v16 = vor.u32 %v1922_v0, %v1921_v59  ;;  %v1926_v17 = vor.u32 %v1925_v46, %v1924_v50  ;;  %v1912_v2 = vor.u32 8388608, %v1911_v41  ;;  %v1933_v15 = vshll.u32 %v3605_v33, %v1918_v18 }
 0x2f0   : > { %v1934_v35 = vshrl.u32 %v3606_v40, %v1919_v61  ;;  %v1751_v49 = vmul.u32 %v1744_v19, %v1735_v34  ;;  %v1929_v26 = vor.u32 %v1928_v52, %v1927_v7  ;;  %v1932_v24 = vor.u32 %v1931_v45, %v1930_v58 }
 0x2f1   : > { %v4329_v36 = vshrl.u32 %v1653_v47, 30  ;;  %vm1936_vm7 = vcmp.lt.s32.totalorder %v1917_v63, 1  ;;  %v1269_v39 = vadd.f32 0.3, %v1261_v13  ;;  %vm3131_vm8 = vcmp.lt.s32.totalorder %v3130_v60, 0 }
 0x2f2   : > { %v1935_v11 = vor.u32 %v1934_v35, %v1933_v15  ;;  %v1756_v12 = vadd.s32 %v1755_v28, %v1751_v49  ;;  %vm1939_vm9 = vcmp.lt.s32.totalorder %v1917_v63, 4  ;;  %v1944_v59 = vsel %vm1936_vm7, %v1923_v16, %v1926_v17 }
 0x2f3   : > { %v1450_v32 = vsub.s32 0, %v4308_v51  ;;  %vm1938_vm10 = vcmp.lt.s32.totalorder %v1917_v63, 3  ;;  %v1945_v18 = vsel %vm1939_vm9, %v1932_v24, 920167782  ;;  %v1952_v41 = vshll.u32 %v1912_v2, 8 }
 0x2f4   : > { %vm1937_vm11 = vcmp.lt.s32.totalorder %v1917_v63, 2  ;;  %v1946_v19 = vsel %vm1938_vm10, %v1929_v26, %v1945_v18  ;;  %v1948_v47 = vsel %vm1936_vm7, %v1926_v17, %v1929_v26  ;;  %v1949_v44 = vsel %vm1939_vm9, %v1935_v11, 1326507024 }
 0x2f5   : > { %v1655_v0 = vshll.u32 %v4329_v36, 30  ;;  %v1947_v50 = vsel %vm1937_vm11, %v1944_v59, %v1946_v19  ;;  %v1950_v46 = vsel %vm1938_vm10, %v1932_v24, %v1949_v44  ;;  %v4340_v52 = vsub.f32 0.7853982, %v1269_v39 }
 0x2f6   : > { %v1757_v34 = vadd.s32 536870912, %v1756_v12  ;;  %v1951_v7 = vsel %vm1937_vm11, %v1948_v47, %v1950_v46  ;;  %v4343_v13 = vmul.u32.u64.low %v1952_v41, %v1947_v50  ;;  %v4344_v58 = vmul.u32.u64.high %v1952_v41, %v1947_v50, %v4343_v13 }
 0x2f7   : > { %v3125_v45 = vmin.u32 %v1450_v32, %v4308_v51  ;;  %v4348_v28 = vmul.u32.u64.low %v1952_v41, %v1951_v7  ;;  %v4349_v2 = vmul.u32.u64.high %v1952_v41, %v1951_v7, %v4348_v28  ;;  %v1559_v15 = vsel %vm3131_vm8, 0, %v3130_v60 }
 0x2f8   : > { %v4352_v35 = vsub.s32 %v1652_v1, %v1655_v0  ;;  %v1941_v49 = vsel %vm1939_vm9, %v1929_v26, 2102212464  ;;  %v4355_v24 = vshrl.u32 %v1757_v34, 30  ;;  %v1920_v11 = vshrl.u32 %v3601_v25, %v1919_v61 }
 0x2f9   : > { %v1803_v39 = vand.u32 2139095040, %v4340_v52  ;;  %v1452_v59 = vclz %v3125_v45  ;;  %v1564_v18 = vsub.s32 4294967266, %v1559_v15  ;;  %v1942_v32 = vsel %vm1938_vm10, %v1926_v17, %v1941_v49 }
 0x2fa   : > { %v1940_v19 = vsel %vm1936_vm7, %v1920_v11, %v1923_v16  ;;  %v1658_v44 = vsub.s32 0, %v4352_v35  ;;  %v1962_v1 = vadd.s32 1, %v4344_v58  ;;  %v1759_v60 = vshll.u32 %v4355_v24, 30 }
 0x2fb   : > { %v1804_v47 = vshrl.u32 %v1803_v39, 23  ;;  %vm1961_vm12 = vc.u32 %v4349_v2, %v4343_v13  ;;  %v1560_v61 = vsub.s32 32, %v1559_v15  ;;  %v3126_v0 = vadd.s32 4294967294, %v1452_v59 }
 0x2fc   : > { %v1943_v50 = vsel %vm1937_vm11, %v1940_v19, %v1942_v32  ;;  %v1565_v46 = vadd.s32 127, %v1564_v18  ;;  %v1544_v16 = vadd.s32 %v4092_v20, %v4099_v48  ;;  %v3133_v17 = vmin.u32 %v1658_v44, %v4352_v35 }
 0x2fd   : > { %v3140_v26 = vadd.s32 4294967169, %v1804_v47  ;;  %v1963_v34 = vsel %vm1961_vm12, %v1962_v1, %v4344_v58  ;;  %v4371_v7 = vsub.s32 %v1756_v12, %v1759_v60  ;;  %v1959_v45 = vmul.u32 %v1952_v41, %v1943_v50 }
 0x2fe   : > { %v1562_v49 = vshrl.u32 %v1544_v16, %v1560_v61  ;;  %vm3127_vm13 = vcmp.lt.s32.totalorder %v3126_v0, 0  ;;  %v1566_v11 = vshll.u32 %v1565_v46, 23  ;;  %v1561_v63 = vshll.u32 %v4230_v37, %v1559_v15 }
 0x2ff   : > { %v1810_v28 = vadd.s32 1, %v3140_v26  ;;  %v1964_v39 = vadd.s32 %v1963_v34, %v1959_v45  ;;  %v1660_v59 = vclz %v3133_v17  ;;  %v1254_v19 = vadd.f32 1.0, %v4020_v23 }
 0x300   : > { %v4375_v20 = vsel %vm3127_vm13, 0, %v3126_v0  ;;  %v1762_v48 = vsub.s32 0, %v4371_v7  ;;  %v1563_v58 = vor.u32 %v1562_v49, %v1561_v63  ;;  %v1567_v32 = vor.u32 4788187, %v1566_v11 }
 0x301   : > { %vm1811_vm14 = vcmp.gt.s32.totalorder %v1810_v28, 0  ;;  %v1965_v41 = vadd.s32 536870912, %v1964_v39  ;;  %v1460_v47 = vsub.s32 4294967266, %v4375_v20  ;;  %v3134_v44 = vadd.s32 4294967294, %v1660_v59 }
 0x302   : > { %v1812_v18 = vsel %vm1811_vm14, %v1810_v28, 0  ;;  %v1263_v60 = vmul.f32 0.25, %v1254_v19  ;;  %v3137_v26 = vmin.u32 %v1762_v48, %v4371_v7  ;;  %v4902_v37 = vand.u32 2147483647, %v4340_v52 }
 0x303   : > { %v1814_v12 = vand.u32 31, %v1812_v18  ;;  %v1570_v15 = vcvt.s32.f32 %v1563_v58  ;;  %v1440_v23 = vadd.s32 %v4173_v8, %v4183_v53  ;;  %v1568_v61 = vand.u32 2147483647, %v1567_v32 }
 0x304   : > { %v1456_v0 = vsub.s32 32, %v4375_v20  ;;  %v4384_v50 = vshrl.u32 %v1965_v41, 30  ;;  %v1461_v16 = vadd.s32 127, %v1460_v47  ;;  %vm3135_vm15 = vcmp.lt.s32.totalorder %v3134_v44, 0 }
 0x305   : > { %v1815_v1 = vsub.s32 32, %v1814_v12  ;;  %v1271_v34 = vadd.f32 0.3, %v1263_v60  ;;  %v1764_v45 = vclz %v3137_v26  ;;  %v1807_v28 = vand.u32 8388607, %v4902_v37 }
 0x306   : > { %v1817_v49 = vshll.u32 %v3601_v25, %v1814_v12  ;;  %v1820_v53 = vshll.u32 %v4910_v27, %v1814_v12  ;;  %v1823_v11 = vshll.u32 %v4908_v29, %v1814_v12  ;;  %v1826_v63 = vshll.u32 %v4906_v31, %v1814_v12 }
 0x307   : > { %v1818_v46 = vshrl.u32 %v4910_v27, %v1815_v1  ;;  %v1821_v17 = vshrl.u32 %v4908_v29, %v1815_v1  ;;  %v1824_v8 = vshrl.u32 %v4906_v31, %v1815_v1  ;;  %v1827_v59 = vshrl.u32 %v3605_v33, %v1815_v1 }
 0x308   : > { %v1967_v19 = vshll.u32 %v4384_v50, 30  ;;  %v1813_v48 = vshrl.u32 %v1812_v18, 5  ;;  %v1830_v32 = vshrl.u32 %v3606_v40, %v1815_v1  ;;  %v1829_v26 = vshll.u32 %v3605_v33, %v1814_v12 }
 0x309   : > { %v1819_v58 = vor.u32 %v1818_v46, %v1817_v49  ;;  %v1822_v41 = vor.u32 %v1821_v17, %v1820_v53  ;;  %v1825_v47 = vor.u32 %v1824_v8, %v1823_v11  ;;  %v1828_v60 = vor.u32 %v1827_v59, %v1826_v63 }
 0x30a   : > { %v1571_v42 = vmul.f32 %v1570_v15, %v1568_v61  ;;  %v1458_v37 = vshrl.u32 %v1440_v23, %v1456_v0  ;;  %v1462_v9 = vshll.u32 %v1461_v16, 23  ;;  %v4400_v56 = vsel %vm3135_vm15, 0, %v3134_v44 }
 0x30b   : > { %v1808_v4 = vor.u32 8388608, %v1807_v28  ;;  %v1831_v31 = vor.u32 %v1830_v32, %v1829_v26  ;;  %v4402_v29 = vsub.f32 0.7853982, %v1271_v34  ;;  %v3138_v27 = vadd.s32 4294967294, %v1764_v45 }
 0x30c   : > { %v4404_v18 = vsub.s32 %v1964_v39, %v1967_v19  ;;  %vm1832_vm0 = vcmp.lt.s32.totalorder %v1813_v48, 1  ;;  %vm1835_vm1 = vcmp.lt.s32.totalorder %v1813_v48, 4  ;;  %vm1834_vm2 = vcmp.lt.s32.totalorder %v1813_v48, 3 }
 0x30d   : > { %v1837_v46 = vsel %vm1835_vm1, %v1825_v47, 2102212464  ;;  %v1840_v17 = vsel %vm1832_vm0, %v1819_v58, %v1822_v41  ;;  %v1841_v49 = vsel %vm1835_vm1, %v1828_v60, 920167782  ;;  %v1816_v12 = vshrl.u32 %v3601_v25, %v1815_v1 }
 0x30e   : > { %vm1833_vm3 = vcmp.lt.s32.totalorder %v1813_v48, 2  ;;  %v1842_v15 = vsel %vm1834_vm2, %v1825_v47, %v1841_v49  ;;  %v1844_v23 = vsel %vm1832_vm0, %v1822_v41, %v1825_v47  ;;  %v1845_v61 = vsel %vm1835_vm1, %v1831_v31, 1326507024 }
 0x30f   : > { %v1843_v44 = vsel %vm1833_vm3, %v1840_v17, %v1842_v15  ;;  %v1848_v0 = vshll.u32 %v1808_v4, 8  ;;  %v2011_v16 = vand.u32 2139095040, %v4402_v29  ;;  %v1970_v39 = vsub.s32 0, %v4404_v18 }
 0x310   : > { %v1836_v34 = vsel %vm1832_vm0, %v1816_v12, %v1819_v58  ;;  %v1838_v45 = vsel %vm1834_vm2, %v1822_v41, %v1837_v46  ;;  %v1846_v28 = vsel %vm1834_vm2, %v1828_v60, %v1845_v61  ;;  %v1572_v63 = vxor.u32 2147483648, %v1571_v42 }
 0x311   : > { %v1847_v8 = vsel %vm1833_vm3, %v1844_v23, %v1846_v28  ;;  %v4411_v53 = vmul.u32.u64.low %v1848_v0, %v1843_v44  ;;  %v4412_v11 = vmul.u32.u64.high %v1848_v0, %v1843_v44, %v4411_v53  ;;  %v2012_v1 = vshrl.u32 %v2011_v16, 23 }
 0x312   : > { %v4415_v59 = vmul.u32.u64.low %v1848_v0, %v1847_v8  ;;  %v4416_v19 = vmul.u32.u64.high %v1848_v0, %v1847_v8, %v4415_v59  ;;  %v1457_v31 = vshll.u32 %v4308_v51, %v4375_v20  ;;  %v1463_v4 = vor.u32 4788187, %v1462_v9 }
 0x313   : > { %v1839_v32 = vsel %vm1833_vm3, %v1836_v34, %v1838_v45  ;;  %v3148_v58 = vadd.s32 4294967169, %v2012_v1  ;;  %vm1490_vm4 = vcmp.lt.s32.totalorder %v4002_v55, 0  ;;  %v1668_v41 = vsub.s32 4294967266, %v4400_v56 }
 0x314   : > { %v3145_v47 = vmin.u32 %v1970_v39, %v4404_v18  ;;  %v1459_v60 = vor.u32 %v1458_v37, %v1457_v31  ;;  %vm3139_vm5 = vcmp.lt.s32.totalorder %v3138_v27, 0  ;;  %v1858_v26 = vadd.s32 1, %v4412_v11 }
 0x315   : > { %v2018_v46 = vadd.s32 1, %v3148_v58  ;;  %v1573_v17 = vsel %vm1490_vm4, %v1572_v63, %v1571_v42  ;;  %v1574_v51 = vsub.s32 4, %v4185_v57  ;;  %v1855_v9 = vmul.u32 %v1848_v0, %v1839_v32 }
 0x316   : > { %vm1857_vm6 = vc.u32 %v4416_v19, %v4411_v53  ;;  %v1464_v20 = vand.u32 2147483647, %v1463_v4  ;;  %v1664_v48 = vsub.s32 32, %v4400_v56  ;;  %v1669_v37 = vadd.s32 127, %v1668_v41 }
 0x317   : > { %v1859_v49 = vsel %vm1857_vm6, %v1858_v26, %v4412_v11  ;;  %vm2019_vm7 = vcmp.gt.s32.totalorder %v2018_v46, 0  ;;  %v4432_v12 = vsel %vm3139_vm5, 0, %v3138_v27  ;;  %v1972_v15 = vclz %v3145_v47 }
 0x318   : > { %v1860_v23 = vadd.s32 %v1859_v49, %v1855_v9  ;;  %v1466_v44 = vcvt.s32.f32 %v1459_v60  ;;  %v2020_v61 = vsel %vm2019_vm7, %v2018_v46, 0  ;;  %vm1489_vm8 = vcmp.le.f32.partialorder %v1488_v3, 0.7853982 }
 0x319   : > { %v1575_v42 = vsel %vm1490_vm4, %v1574_v51, %v4185_v57  ;;  %v1648_v0 = vadd.s32 %v4250_v30, %v4256_v54  ;;  %v4442_v39 = vsel %vm1489_vm8, %v4002_v55, %v1573_v17  ;;  %v1772_v34 = vsub.s32 4294967266, %v4432_v12 }
 0x31a   : > { %v1861_v16 = vadd.s32 536870912, %v1860_v23  ;;  %v4444_v27 = vmul.f32 %v1466_v44, %v1464_v20  ;;  %v2022_v45 = vand.u32 31, %v2020_v61  ;;  %v1670_v8 = vshll.u32 %v1669_v37, 23 }
 0x31b   : > { %v1666_v28 = vshrl.u32 %v1648_v0, %v1664_v48  ;;  %v3146_v11 = vadd.s32 4294967294, %v1972_v15  ;;  %v4449_v63 = vsel %vm1489_vm8, 0, %v1575_v42  ;;  %v1665_v57 = vshll.u32 %v4352_v35, %v4400_v56 }
 0x31c   : > { %v4447_v3 = vshrl.u32 %v1861_v16, 30  ;;  %v2023_v1 = vsub.s32 32, %v2022_v45  ;;  %3478 = vcosq.f32 %v4442_v39  ;;  %v1468_v54 = vxor.u32 2147483648, %v4444_v27 }
 0x31d   : > { %v1470_v59 = vsub.s32 4, %v4267_v21  ;;  %v1773_v31 = vadd.s32 127, %v1772_v34  ;;  %v4457_v4 = vor.u32 %v1666_v28, %v1665_v57  ;;  %v4459_v32 = vor.u32 4788187, %v1670_v8 }
 0x31e   : > { %v1863_v30 = vshll.u32 %v4447_v3, 30  ;;  %vm3147_vm9 = vcmp.lt.s32.totalorder %v3146_v11, 0  ;;  %v1752_v41 = vadd.s32 %v4300_v62, %v4298_v22  ;;  %v4467_v56 = vadd.s32 %v4343_v13, %v4349_v2 }
 0x31f   : > { %v2008_v35 = vand.u32 2147483647, %v4402_v29  ;;  %v2035_v47 = vshrl.u32 %v3605_v33, %v2023_v1  ;;  %v1768_v60 = vsub.s32 32, %v4432_v12  ;;  %v4914_v46 = vmov 2475754826  }
 0x320   : > { %v4461_v58 = vsub.s32 %v1860_v23, %v1863_v30  ;;  %v2026_v17 = vshrl.u32 %v4914_v46, %v2023_v1  ;;  %v4915_v51 = vmov 2131351028   ;;  %v1774_v20 = vshll.u32 %v1773_v31, 23 }
 0x321   : > { %v2029_v9 = vshrl.u32 %v4915_v51, %v2023_v1  ;;  %v4475_v48 = vsel %vm3147_vm9, 0, %v3146_v11  ;;  %v4916_v22 = vmov 2102212464   ;;  %v2021_v49 = vshrl.u32 %v2020_v61, 5 }
 0x322   : > { %v1866_v26 = vsub.s32 0, %v4461_v58  ;;  %v2032_v62 = vshrl.u32 %v4916_v22, %v2023_v1  ;;  %v2034_v13 = vshll.u32 %v4916_v22, %v2022_v45  ;;  %v2025_v37 = vshll.u32 %v3601_v25, %v2022_v45 }
 0x323   : > { %v2028_v15 = vshll.u32 %v4914_v46, %v2022_v45  ;;  %v2015_v23 = vand.u32 8388607, %v2008_v35  ;;  %v2031_v44 = vshll.u32 %v4915_v51, %v2022_v45  ;;  %v2038_v0 = vshrl.u32 %v3606_v40, %v2023_v1 }
 0x324   : > { %v3141_v2 = vmin.u32 %v1866_v26, %v4461_v58  ;;  %v2036_v42 = vor.u32 %v2035_v47, %v2034_v13  ;;  %v1980_v16 = vsub.s32 4294967266, %v4475_v48  ;;  %v2027_v28 = vor.u32 %v2026_v17, %v2025_v37 }
 0x325   : > { %v2030_v8 = vor.u32 %v2029_v9, %v2028_v15  ;;  %v1769_v61 = vshll.u32 %v4371_v7, %v4432_v12  ;;  %v1770_v11 = vshrl.u32 %v1752_v41, %v1768_v60  ;;  %v2033_v57 = vor.u32 %v2032_v62, %v2031_v44 }
 0x326   : > { %v1868_v34 = vclz %v3141_v2  ;;  %v2037_v30 = vshll.u32 %v3605_v33, %v2022_v45  ;;  %v4490_v31 = vor.u32 4788187, %v1774_v20  ;;  %v1976_v26 = vsub.s32 32, %v4475_v48  ;;  %v4493_v47 = vpop.eup %3478 }
 0x327   : > { %vm2043_vm10 = vcmp.lt.s32.totalorder %v2021_v49, 4  ;;  %vm1386_vm11 = vcmp.lt.s32.totalorder %v4037_v14, 0  ;;  %v2016_v40 = vor.u32 8388608, %v2015_v23  ;;  %vm2040_vm12 = vcmp.lt.s32.totalorder %v2021_v49, 1 }
 0x328   : > { %v3142_v46 = vadd.s32 4294967294, %v1868_v34  ;;  %v2039_v17 = vor.u32 %v2038_v0, %v2037_v30  ;;  %v2049_v51 = vsel %vm2043_vm10, %v2036_v42, 920167782  ;;  %v1981_v7 = vadd.s32 127, %v1980_v16 }
 0x329   : > { %vm2042_vm14 = vcmp.lt.s32.totalorder %v2021_v49, 3  ;;  %v2048_v33 = vsel %vm2040_vm12, %v2027_v28, %v2030_v8  ;;  %v1856_v12 = vadd.s32 %v4411_v53, %v4416_v19  ;;  %v2045_v41 = vsel %vm2043_vm10, %v2033_v57, 2102212464 }
 0x32a   : > { %vm3143_vm13 = vcmp.lt.s32.totalorder %v3142_v46, 0  ;;  %v2050_v60 = vsel %vm2042_vm14, %v2033_v57, %v2049_v51  ;;  %v2024_v22 = vshrl.u32 %v3601_v25, %v2023_v1  ;;  %vm2041_vm15 = vcmp.lt.s32.totalorder %v2021_v49, 2 }
 0x32b   : > { %v1871_v45 = vsel %vm3143_vm13, 0, %v3142_v46  ;;  %v4917_v62 = vand.u32 2147483647, %v4037_v14  ;;  %v2051_v2 = vsel %vm2041_vm15, %v2048_v33, %v2050_v60  ;;  %v2052_v53 = vsel %vm2040_vm12, %v2030_v8, %v2033_v57 }
 0x32c   : > { %v1872_v9 = vsub.s32 32, %v1871_v45  ;;  %v1876_v20 = vsub.s32 4294967266, %v1871_v45  ;;  %v2053_v19 = vsel %vm2043_vm10, %v2039_v17, 1326507024  ;;  %v2056_v37 = vshll.u32 %v2016_v40, 8 }
 0x32d   : > { %vm4505_vm0 = vcmp.le.f32.partialorder %v4917_v62, 0.7853982  ;;  %v2044_v23 = vsel %vm2040_vm12, %v2024_v22, %v2027_v28  ;;  %v2046_v44 = vsel %vm2042_vm14, %v2030_v8, %v2045_v41  ;;  %v2054_v25 = vsel %vm2042_vm14, %v2036_v42, %v2053_v19 }
 0x32e   : > { %v1877_v15 = vadd.s32 127, %v1876_v20  ;;  %v1874_v1 = vshrl.u32 %v1856_v12, %v1872_v9  ;;  %v2055_v0 = vsel %vm2041_vm15, %v2052_v53, %v2054_v25  ;;  %v1982_v30 = vshll.u32 %v1981_v7, 23 }
 0x32f   : > { %v4516_v16 = vmul.u32.u64.low %v2056_v37, %v2051_v2  ;;  %v4517_v34 = vmul.u32.u64.high %v2056_v37, %v2051_v2, %v4516_v16  ;;  %v4520_v57 = vmul.u32.u64.low %v2056_v37, %v2055_v0  ;;  %v4521_v51 = vmul.u32.u64.high %v2056_v37, %v2055_v0, %v4520_v57 }
 0x330   : > { %v1878_v46 = vshll.u32 %v1877_v15, 23  ;;  %v1672_v40 = vand.u32 2147483647, %v4459_v32  ;;  %v1771_v17 = vor.u32 %v1770_v11, %v1769_v61  ;;  %v1873_v28 = vshll.u32 %v4461_v58, %v1871_v45 }
 0x331   : > { %v2047_v8 = vsel %vm2041_vm15, %v2044_v23, %v2046_v44  ;;  %3480 = vsinq.f32 %v4442_v39  ;;  %v1469_v42 = vsel %vm1386_vm11, %v1468_v54, %v4444_v27  ;;  %v1978_v7 = vshrl.u32 %v4467_v56, %v1976_v26 }
 0x332   : > { %v1879_v33 = vor.u32 4788187, %v1878_v46  ;;  %v1674_v12 = vcvt.s32.f32 %v4457_v4  ;;  %v1776_v32 = vand.u32 2147483647, %v4490_v31  ;;  %v1875_v61 = vor.u32 %v1874_v1, %v1873_v28 }
 0x333   : > { %v2066_v58 = vadd.s32 1, %v4517_v34  ;;  %v1977_v49 = vshll.u32 %v4404_v18, %v4475_v48  ;;  %v1983_v39 = vor.u32 4788187, %v1982_v30  ;;  %v2063_v11 = vmul.u32 %v2056_v37, %v2047_v8 }
 0x334   : > { %vm2065_vm1 = vc.u32 %v4521_v51, %v4516_v16  ;;  %v1675_v45 = vmul.f32 %v1674_v12, %v1672_v40  ;;  %v1778_v27 = vcvt.s32.f32 %v1771_v17  ;;  %v1880_v54 = vand.u32 2147483647, %v1879_v33 }
 0x335   : > { %v2067_v56 = vsel %vm2065_vm1, %v2066_v58, %v4517_v34  ;;  %v1472_v4 = vsel %vm4505_vm0, %v4037_v14, %v1469_v42  ;;  %v1979_v31 = vor.u32 %v1978_v7, %v1977_v49  ;;  %v1581_v41 = vadd.s32 3, %v4449_v63 }
 0x336   : > { %v2068_v26 = vadd.s32 %v2067_v56, %v2063_v11  ;;  %v1779_v60 = vmul.f32 %v1778_v27, %v1776_v32  ;;  %v1882_v18 = vcvt.s32.f32 %v1875_v61  ;;  %v1471_v48 = vsel %vm1386_vm11, %v1470_v59, %v4267_v21 }
 0x337   : > { %v1984_v9 = vand.u32 2147483647, %v1983_v39  ;;  %3482 = vcosq.f32 %v1472_v4  ;;  %v1676_v22 = vxor.u32 2147483648, %v1675_v45  ;;  %v4551_v2 = vand.u32 3, %v4449_v63 }
 0x338   : > { %v2069_v20 = vadd.s32 536870912, %v2068_v26  ;;  %v1883_v62 = vmul.f32 %v1882_v18, %v1880_v54  ;;  %3484 = vsinq.f32 %v1472_v4  ;;  %v1986_v53 = vcvt.s32.f32 %v1979_v31 }
 0x339   : > { %v4555_v37 = vand.u32 3, %v1581_v41  ;;  %v1473_v15 = vsel %vm4505_vm0, 0, %v1471_v48  ;;  %v1780_v23 = vxor.u32 2147483648, %v1779_v60  ;;  %vm1594_vm2 = vcmp.lt.s32.totalorder %v4065_v5, 0 }
 0x33a   : > { %v4553_v19 = vshrl.u32 %v2069_v20, 30  ;;  %v1987_v21 = vmul.f32 %v1986_v53, %v1984_v9  ;;  %v4920_v63 = vand.u32 2147483647, %v4065_v5  ;;  %v1677_v1 = vsel %vm1594_vm2, %v1676_v22, %v1675_v45 }
 0x33b   : > { %v4559_v44 = vpop.eup %3480  ;;  %v1884_v0 = vxor.u32 2147483648, %v1883_v62  ;;  %vm2413_vm4 = vcmp.eq.s32.totalorder %v4551_v2, 0  ;;  %v1477_v13 = vadd.s32 3, %v1473_v15  ;;  %vm1698_vm5 = vcmp.lt.s32.totalorder %v4169_v38, 0 }
 0x33c   : > { %v2071_v59 = vshll.u32 %v4553_v19, 30  ;;  %vm4565_vm3 = vcmp.le.f32.partialorder %v4920_v63, 0.7853982  ;;  %vm1587_vm6 = vcmp.eq.s32.totalorder %v4555_v37, 2  ;;  %vm2416_vm7 = vcmp.eq.s32.totalorder %v4551_v2, 2 }
 0x33d   : > { %v4577_v30 = vand.u32 3, %v1473_v15  ;;  %v1781_v46 = vsel %vm1698_vm5, %v1780_v23, %v1779_v60  ;;  %vm2412_vm8 = vcmp.lt.s32.totalorder %v4551_v2, 2  ;;  %v1680_v57 = vsel %vm4565_vm3, %v4065_v5, %v1677_v1 }
 0x33e   : > { %v4573_v34 = vsub.s32 %v2068_v26, %v2071_v59  ;;  %v1988_v40 = vxor.u32 2147483648, %v1987_v21  ;;  %vm1802_vm9 = vcmp.lt.s32.totalorder %v4340_v52, 0  ;;  %v1585_v28 = vxor.u32 2147483648, %v4559_v44 }
 0x33f   : > { %v1588_v8 = vxor.u32 2147483648, %v4493_v47  ;;  %v4923_v42 = vand.u32 2147483647, %v4169_v38  ;;  %v1885_v33 = vsel %vm1802_vm9, %v1884_v0, %v1883_v62  ;;  %v4597_v12 = vand.u32 3, %v1477_v13 }
 0x340   : > { %v2074_v17 = vsub.s32 0, %v4573_v34  ;;  %v1678_v32 = vsub.s32 4, %v4329_v36  ;;  %vm1580_vm11 = vweird.f32 %v4002_v55  ;;  %vm1584_vm12 = vcmp.eq.s32.totalorder %v4555_v37, 0 }
 0x341   : > { %vm4591_vm10 = vcmp.le.f32.partialorder %v4923_v42, 0.7853982  ;;  %v4604_v49 = vpop.eup %3482  ;;  %vm2310_vm13 = vcmp.eq.s32.totalorder %v4577_v30, 0  ;;  %3486 = vcosq.f32 %v1680_v57  ;;  %vm1906_vm14 = vcmp.lt.s32.totalorder %v4228_v43, 0 }
 0x342   : > { %v1784_v61 = vsel %vm4591_vm10, %v4169_v38, %v1781_v46  ;;  %v3149_v58 = vmin.u32 %v2074_v17, %v4573_v34  ;;  %v4926_v39 = vand.u32 2147483647, %v4340_v52  ;;  %v4616_v45 = vpop.eup %3484  ;;  %3488 = vsinq.f32 %v1680_v57 }
 0x343   : > { %v1989_v27 = vsel %vm1906_vm14, %v1988_v40, %v1987_v21  ;;  %v2415_v4 = vsel %vm2413_vm4, %v4493_v47, %v1585_v28  ;;  %v2418_v31 = vsel %vm2416_vm7, %v1588_v8, %v4559_v44  ;;  %vm2309_vm0 = vcmp.lt.s32.totalorder %v4577_v30, 2 }
 0x344   : > { %vm4612_vm15 = vcmp.le.f32.partialorder %v4926_v39, 0.7853982  ;;  %v2076_v56 = vclz %v3149_v58  ;;  %v1782_v26 = vsub.s32 4, %v4355_v24  ;;  %3490 = vcosq.f32 %v1784_v61 }
 0x345   : > { %v1888_v54 = vsel %vm4612_vm15, %v4340_v52, %v1885_v33  ;;  %v1679_v41 = vsel %vm1594_vm2, %v1678_v32, %v4329_v36  ;;  %3492 = vsinq.f32 %v1784_v61  ;;  %v4929_v60 = vand.u32 2147483647, %v4228_v43 }
 0x346   : > { %v3150_v48 = vadd.s32 4294967294, %v2076_v56  ;;  %v1481_v9 = vxor.u32 2147483648, %v4616_v45  ;;  %v1484_v20 = vxor.u32 2147483648, %v4604_v49  ;;  %3494 = vcosq.f32 %v1888_v54 }
 0x347   : > { %vm4636_vm1 = vcmp.le.f32.partialorder %v4929_v60, 0.7853982  ;;  %v1589_v36 = vsel %vm1587_vm6, %v1588_v8, %v4559_v44  ;;  %vm2313_vm2 = vcmp.eq.s32.totalorder %v4577_v30, 2  ;;  %3496 = vsinq.f32 %v1888_v54 }
 0x348   : > { %v1992_v22 = vsel %vm4636_vm1, %v4228_v43, %v1989_v27  ;;  %vm3151_vm4 = vcmp.lt.s32.totalorder %v3150_v48, 0  ;;  %v2419_v62 = vsel %vm2412_vm8, %v2415_v4, %v2418_v31  ;;  %v1681_v53 = vsel %vm4565_vm3, 0, %v1679_v41 }
 0x349   : > { %v1783_v15 = vsel %vm1698_vm5, %v1782_v26, %v4355_v24  ;;  %v2079_v23 = vsel %vm3151_vm4, 0, %v3150_v48  ;;  %3498 = vcosq.f32 %v1992_v22  ;;  %v1886_v21 = vsub.s32 4, %v4447_v3 }
 0x34a   : > { %v2064_v44 = vadd.s32 %v4516_v16, %v4521_v51  ;;  %v2080_v59 = vsub.s32 32, %v2079_v23  ;;  %v2312_v2 = vsel %vm2310_vm13, %v4604_v49, %v1481_v9  ;;  %v2315_v63 = vsel %vm2313_vm2, %v1484_v20, %v4616_v45 }
 0x34b   : > { %3500 = vsinq.f32 %v1992_v22  ;;  %v2084_v25 = vsub.s32 4294967266, %v2079_v23  ;;  %v1586_v24 = vsel %vm1584_vm12, %v4493_v47, %v1585_v28  ;;  %v2420_v1 = vsel %vm1580_vm11, nan, %v2419_v62  ;;  %v4672_v51 = vpop.eup %3486 }
 0x34c   : > { %v4670_v0 = vand.u32 3, %v1681_v53  ;;  %v2082_v16 = vshrl.u32 %v2064_v44, %v2080_v59  ;;  %v4676_v13 = vsel %vm4591_vm10, 0, %v1783_v15  ;;  %v1990_v46 = vsub.s32 4, %v4384_v50  ;;  %v4680_v17 = vpop.eup %3488 }
 0x34d   : > { %v2081_v57 = vshll.u32 %v4573_v34, %v2079_v23  ;;  %v2085_v40 = vadd.s32 127, %v2084_v25  ;;  %vm1583_vm3 = vcmp.lt.s32.totalorder %v4555_v37, 2  ;;  %vm1476_vm5 = vweird.f32 %v4037_v14 }
 0x34e   : > { %v2316_v47 = vsel %vm2309_vm0, %v2312_v2, %v2315_v63  ;;  %v1887_v28 = vsel %vm1802_vm9, %v1886_v21, %v4447_v3  ;;  %v4689_v8 = vpop.eup %3490  ;;  %v4691_v42 = vsel %vm1583_vm3, %v1586_v24, %v1589_v36  ;;  %vm1483_vm6 = vcmp.eq.s32.totalorder %v4597_v12, 2 }
 0x34f   : > { %v2083_v34 = vor.u32 %v2082_v16, %v2081_v57  ;;  %v2086_v7 = vshll.u32 %v2085_v40, 23  ;;  %v4694_v33 = vpop.eup %3492  ;;  %3502 = vrcp.f32 %v2420_v1  ;;  %v4696_v37 = vadd.s32 3, %v1681_v53 }
 0x350   : > { %vm2516_vm7 = vcmp.eq.s32.totalorder %v4670_v0, 0  ;;  %v2617_v30 = vand.u32 3, %v4676_v13  ;;  %v4700_v32 = vpop.eup %3494  ;;  %vm1480_vm8 = vcmp.eq.s32.totalorder %v4597_v12, 0  ;;  %v2317_v3 = vsel %vm1476_vm5, nan, %v2316_v47 }
 0x351   : > { %vm2515_vm9 = vcmp.lt.s32.totalorder %v4670_v0, 2  ;;  %v1991_v61 = vsel %vm1906_vm14, %v1990_v46, %v4384_v50  ;;  %v1889_v58 = vsel %vm4612_vm15, 0, %v1887_v28  ;;  %v2087_v39 = vor.u32 4788187, %v2086_v7  ;;  %v4711_v27 = vpop.eup %3496 }
 0x352   : > { %v1485_v54 = vsel %vm1483_vm6, %v1484_v20, %v4616_v45  ;;  %v1689_v56 = vxor.u32 2147483648, %v4680_v17  ;;  %v1692_v4 = vxor.u32 2147483648, %v4672_v51  ;;  %vm2519_vm10 = vcmp.eq.s32.totalorder %v4670_v0, 2 }
 0x353   : > { %v1793_v31 = vxor.u32 2147483648, %v4694_v33  ;;  %v1796_v50 = vxor.u32 2147483648, %v4689_v8  ;;  %v2088_v26 = vand.u32 2147483647, %v2087_v39  ;;  %v2090_v11 = vcvt.s32.f32 %v2083_v34  ;;  %v4721_v41 = vpop.eup %3498 }
 0x354   : > { %3504 = vrcp.f32 %v2317_v3  ;;  %vm1684_vm12 = vweird.f32 %v4065_v5  ;;  %vm2619_vm13 = vcmp.eq.s32.totalorder %v2617_v30, 0  ;;  %v1993_v60 = vsel %vm4636_vm1, 0, %v1991_v61 }
 0x355   : > { %v2720_v48 = vand.u32 3, %v1889_v58  ;;  %v4726_v20 = vpop.eup %3500  ;;  %vm1788_vm14 = vweird.f32 %v4169_v38  ;;  %vm2622_vm15 = vcmp.eq.s32.totalorder %v2617_v30, 2  ;;  %v1897_v22 = vxor.u32 2147483648, %v4711_v27 }
 0x356   : > { %v1900_v36 = vxor.u32 2147483648, %v4700_v32  ;;  %v2091_v62 = vmul.f32 %v2090_v11, %v2088_v26  ;;  %vm1479_vm0 = vcmp.lt.s32.totalorder %v4597_v12, 2  ;;  %v2518_v18 = vsel %vm2516_vm7, %v4672_v51, %v1689_v56 }
 0x357   : > { %v2521_v53 = vsel %vm2519_vm10, %v1692_v4, %v4680_v17  ;;  %vm4744_vm1 = vcmp.le.f32.partialorder %v2008_v35, 0.7853982  ;;  %vm2010_vm2 = vcmp.lt.s32.totalorder %v4402_v29, 0  ;;  %v2621_v23 = vsel %vm2619_vm13, %v4689_v8, %v1793_v31 }
 0x358   : > { %v2624_v21 = vsel %vm2622_vm15, %v1796_v50, %v4694_v33  ;;  %v2823_v44 = vand.u32 3, %v1993_v60  ;;  %v2092_v59 = vxor.u32 2147483648, %v2091_v62  ;;  %v2001_v2 = vxor.u32 2147483648, %v4726_v20 }
 0x359   : > { %v2004_v63 = vxor.u32 2147483648, %v4721_v41  ;;  %vm2722_vm4 = vcmp.eq.s32.totalorder %v2720_v48, 0  ;;  %vm2725_vm3 = vcmp.eq.s32.totalorder %v2720_v48, 2  ;;  %v2094_v1 = vsub.s32 4, %v4553_v19  ;;  %v3503_v16 = vpop.eup %3502 }
 0x35a   : > { %v2724_v35 = vsel %vm2722_vm4, %v4700_v32, %v1897_v22  ;;  %v2727_v25 = vsel %vm2725_vm3, %v1900_v36, %v4711_v27  ;;  %v2093_v24 = vsel %vm2010_vm2, %v2092_v59, %v2091_v62  ;;  %v1482_v46 = vsel %vm1480_vm8, %v4604_v49, %v1481_v9 }
 0x35b   : > { %v2522_v57 = vsel %vm2515_vm9, %v2518_v18, %v2521_v53  ;;  %vm2618_vm6 = vcmp.lt.s32.totalorder %v2617_v30, 2  ;;  %v2096_v40 = vsel %vm4744_vm1, %v4402_v29, %v2093_v24  ;;  %v1789_v47 = vadd.s32 3, %v4676_v13 }
 0x35c   : > { %v2625_v28 = vsel %vm2618_vm6, %v2621_v23, %v2624_v21  ;;  %vm2721_vm7 = vcmp.lt.s32.totalorder %v2720_v48, 2  ;;  %3506 = vcosq.f32 %v2096_v40  ;;  %vm2825_vm10 = vcmp.eq.s32.totalorder %v2823_v44, 0 }
 0x35d   : > { %vm2828_vm13 = vcmp.eq.s32.totalorder %v2823_v44, 2  ;;  %v2728_v45 = vsel %vm2721_vm7, %v2724_v35, %v2727_v25  ;;  %3508 = vsinq.f32 %v2096_v40  ;;  %v2523_v49 = vsel %vm1684_vm12, nan, %v2522_v57 }
 0x35e   : > { %v2827_v9 = vsel %vm2825_vm10, %v4721_v41, %v2001_v2  ;;  %v2830_v0 = vsel %vm2828_vm13, %v2004_v63, %v4726_v20  ;;  %v2095_v13 = vsel %vm2010_vm2, %v2094_v1, %v4553_v19  ;;  %v3505_v34 = vpop.eup %3504  ;;  %v1686_v7 = vand.u32 3, %v4696_v37 }
 0x35f   : > { %v2626_v30 = vsel %vm1788_vm14, nan, %v2625_v28  ;;  %vm1892_vm8 = vweird.f32 %v4340_v52  ;;  %v1893_v3 = vadd.s32 3, %v1889_v58  ;;  %v1591_v61 = vsel %vm1580_vm11, nan, %v4691_v42 }
 0x360   : > { %v1486_v39 = vsel %vm1479_vm0, %v1482_v46, %v1485_v54  ;;  %vm2824_vm9 = vcmp.lt.s32.totalorder %v2823_v44, 2  ;;  %v2729_v19 = vsel %vm1892_vm8, nan, %v2728_v45  ;;  %3510 = vrcp.f32 %v2523_v49 }
 0x361   : > { %v1790_v26 = vand.u32 3, %v1789_v47  ;;  %v2831_v37 = vsel %vm2824_vm9, %v2827_v9, %v2830_v0  ;;  %v2097_v11 = vsel %vm4744_vm1, 0, %v2095_v13  ;;  %v2946_v48 = vmul.f32 %v3503_v16, %v1591_v61 }
 0x362   : > { %3512 = vrcp.f32 %v2626_v30  ;;  %vm1996_vm15 = vweird.f32 %v4228_v43  ;;  %v1997_v58 = vadd.s32 3, %v1993_v60  ;;  %vm1687_vm2 = vcmp.lt.s32.totalorder %v1686_v7, 2 }
 0x363   : > { %vm1688_vm11 = vcmp.eq.s32.totalorder %v1686_v7, 0  ;;  %v1894_v55 = vand.u32 3, %v1893_v3  ;;  %3514 = vrcp.f32 %v2729_v19  ;;  %v1487_v12 = vsel %vm1476_vm5, nan, %v1486_v39 }
 0x364   : > { %vm1691_vm0 = vcmp.eq.s32.totalorder %v1686_v7, 2  ;;  %v2832_v42 = vsel %vm1996_vm15, nan, %v2831_v37  ;;  %v2926_v54 = vand.u32 3, %v2097_v11  ;;  %v2945_v62 = vmul.f32 %v3505_v34, %v1487_v12 }
 0x365   : > { %vm1791_vm4 = vcmp.lt.s32.totalorder %v1790_v26, 2  ;;  %vm1792_vm1 = vcmp.eq.s32.totalorder %v1790_v26, 0  ;;  %vm1795_vm3 = vcmp.eq.s32.totalorder %v1790_v26, 2  ;;  %v1690_v60 = vsel %vm1688_vm11, %v4672_v51, %v1689_v56 }
 0x366   : > { %v3507_v18 = vpop.eup %3506  ;;  %v1693_v53 = vsel %vm1691_vm0, %v1692_v4, %v4680_v17  ;;  %v1797_v14 = vsel %vm1795_vm3, %v1796_v50, %v4694_v33  ;;  %v1998_v15 = vand.u32 3, %v1997_v58  ;;  %v1794_v21 = vsel %vm1792_vm1, %v4689_v8, %v1793_v31 }
 0x367   : > { %v3509_v23 = vpop.eup %3508  ;;  %3516 = vrcp.f32 %v2832_v42  ;;  %vm1896_vm5 = vcmp.eq.s32.totalorder %v1894_v55, 0  ;;  %v2108_v44 = vxor.u32 2147483648, %v3507_v18  ;;  %vm1899_vm6 = vcmp.eq.s32.totalorder %v1894_v55, 2 }
 0x368   : > { %v2101_v59 = vadd.s32 3, %v2097_v11  ;;  %v2105_v56 = vxor.u32 2147483648, %v3509_v23  ;;  %vm2931_vm7 = vcmp.eq.s32.totalorder %v2926_v54, 2  ;;  %v1898_v51 = vsel %vm1896_vm5, %v4700_v32, %v1897_v22 }
 0x369   : > { %v1901_v17 = vsel %vm1899_vm6, %v1900_v36, %v4711_v27  ;;  %vm2928_vm10 = vcmp.eq.s32.totalorder %v2926_v54, 0  ;;  %v2933_v4 = vsel %vm2931_vm7, %v2108_v44, %v3509_v23  ;;  %v1694_v33 = vsel %vm1687_vm2, %v1690_v60, %v1693_v53 }
 0x36a   : > { %vm2000_vm13 = vcmp.eq.s32.totalorder %v1998_v15, 0  ;;  %vm2927_vm9 = vcmp.lt.s32.totalorder %v2926_v54, 2  ;;  %v2930_v8 = vsel %vm2928_vm10, %v3507_v18, %v2105_v56  ;;  %v3511_v31 = vpop.eup %3510  ;;  %v1798_v50 = vsel %vm1791_vm4, %v1794_v21, %v1797_v14 }
 0x36b   : > { %vm1895_vm11 = vcmp.lt.s32.totalorder %v1894_v55, 2  ;;  %vm2100_vm0 = vweird.f32 %v4402_v29  ;;  %v2934_v35 = vsel %vm2927_vm9, %v2930_v8, %v2933_v4  ;;  %vm2003_vm1 = vcmp.eq.s32.totalorder %v1998_v15, 2 }
 0x36c   : > { %v3513_v25 = vpop.eup %3512  ;;  %v1902_v22 = vsel %vm1895_vm11, %v1898_v51, %v1901_v17  ;;  %v2102_v24 = vand.u32 3, %v2101_v59  ;;  %v2935_v32 = vsel %vm2100_vm0, nan, %v2934_v35  ;;  %v1695_v36 = vsel %vm1684_vm12, nan, %v1694_v33 }
 0x36d   : > { %v3515_v27 = vpop.eup %3514  ;;  %v2002_v1 = vsel %vm2000_vm13, %v4721_v41, %v2001_v2  ;;  %v2005_v16 = vsel %vm2003_vm1, %v2004_v63, %v4726_v20  ;;  %3518 = vrcp.f32 %v2935_v32  ;;  %v2947_v46 = vmul.f32 %v3511_v31, %v1695_v36 }
 0x36e   : > { %3520 = vtanh.f32 %v4201_v6  ;;  %v1799_v57 = vsel %vm1788_vm14, nan, %v1798_v50  ;;  %vm1999_vm2 = vcmp.lt.s32.totalorder %v1998_v15, 2  ;;  %v1903_v5 = vsel %vm1892_vm8, nan, %v1902_v22 }
 0x36f   : > { %3522 = vtanh.f32 %v2946_v48  ;;  %v2948_v40 = vmul.f32 %v3513_v25, %v1799_v57  ;;  %v2006_v47 = vsel %vm1999_vm2, %v2002_v1, %v2005_v16  ;;  %v2949_v28 = vmul.f32 %v3515_v27, %v1903_v5 }
 0x370   : > { %vm2104_vm12 = vcmp.eq.s32.totalorder %v2102_v24, 0  ;;  %vm2107_vm4 = vcmp.eq.s32.totalorder %v2102_v24, 2  ;;  %3524 = vtanh.f32 %v2945_v62  ;;  %v2007_v38 = vsel %vm1996_vm15, nan, %v2006_v47 }
 0x371   : > { %v3517_v2 = vpop.eup %3516  ;;  %v2106_v41 = vsel %vm2104_vm12, %v3507_v18, %v2105_v56  ;;  %v2109_v20 = vsel %vm2107_vm4, %v2108_v44, %v3509_v23  ;;  %3526 = vtanh.f32 %v2947_v46  ;;  %vm2103_vm14 = vcmp.lt.s32.totalorder %v2102_v24, 2 }
 0x372   : > { %3528 = vtanh.f32 %v2948_v40  ;;  %v2950_v6 = vmul.f32 %v3517_v2, %v2007_v38  ;;  %v2110_v63 = vsel %vm2103_vm14, %v2106_v41, %v2109_v20  ;;  %v3608_v49 = vmov 1966171168  }
 0x373   : > { %3530 = vtanh.f32 %v2949_v28  ;;  %v2111_v52 = vsel %vm2100_vm0, nan, %v2110_v63  ;;  %v2973_v9 = vunpack.c.l.s4 %v3608_v49 }
 0x374   : > { %3532 = vtanh.f32 %v2950_v6 }
 0x375   : > { %v2974_v30 = vunpack.c.0.s8 %v2973_v9 }
 0x377   : > { %v3519_v45 = vpop.eup %3518  ;;  %v2977_v26 = vsub.s32 %v2974_v30, %v3766_v10 }
 0x378   : > { %v3521_v0 = vpop.eup %3520  ;;  %v2951_v13 = vmul.f32 %v3519_v45, %v2111_v52 }
 0x379   : > { %v3523_v34 = vpop.eup %3522 }
 0x37a   : > { %3534 = vtanh.f32 %v2951_v13  ;;  %v3525_v7 = vpop.eup %3524 }
 0x37b   : > { %v3527_v43 = vpop.eup %3526  ;;  %v2968_v39 = vcombine.low %v3521_v0, %v3525_v7 }
 0x37c   : > { %v3529_v3 = vpop.eup %3528  ;;  %v2969_v19 = vcombine.low %v3523_v34, %v3527_v43 }
 0x37d   : > { %v3531_v61 = vpop.eup %3530  ;;  %v2978_v11 = vrot.slane %v2968_v39, %v2977_v26 }
 0x37e   : > { %v2970_v29 = vcombine.low %v3529_v3, %v3531_v61  ;;  %v3533_v37 = vpop.eup %3532  ;;  %v2985_v48 = vrot.slane %v2969_v19, %v2977_v26 }
 0x380   : > { %v2992_v12 = vrot.slane %v2970_v29, %v2977_v26  ;;  %v3000_v54 = vcombine.low %v2978_v11, %v2985_v48 }
 0x382   : > { %v3008_v18 = vrot.slane %v3000_v54, %v2977_v26 }
 0x384   : > { %v3535_v58 = vpop.eup %3534 }
 0x385   : > { %v2971_v55 = vcombine.low %v3533_v37, %v3535_v58 }
 0x387   : > { %v2999_v42 = vrot.slane %v2971_v55, %v2977_v26 }
 0x389   : > { %v3001_v62 = vcombine.low %v2992_v12, %v2999_v42 }
 0x38b   : > { %v3015_v60 = vrot.slane %v3001_v62, %v2977_v26 }
 0x38d   : > { %v3016_v53 = vcombine.low %v3008_v18, %v3015_v60 }
 0x38f   : > { %3018 = vst [vmem:[%s243_s20] sm:$0xff] %v3016_v53 }
 0x390   : > { %3549 = shalt.err (!%p3546_p3)
}
 0x391   : > { %s3550_s14 = scalar_lea.hbm %s4852_s9, 128  ;;  %s3554_s17 = scalar_lea.hbm %s4900_s6, 256 }
 0x392   : > { %p3551_p4 = scmp.ne.s32.totalorder %s4852_s9, %s3550_s14  ;;  %p3555_p9 = scmp.lt.u32.totalorder %s4852_s9, %s4900_s6 }
 0x393   : > { %p3556_p10 = scmp.lt.u32.totalorder %s3554_s17, %s3550_s14  ;;  %p3558_p12 = scmp.lt.u32.totalorder %s3550_s14, %s4852_s9 }
 0x394   : > { %p3552_p7 = pnand %p3551_p4, %p3683_p5 }
 0x395   : > { %p3557_p11 = por %p3556_p10, %p3555_p9 }
 0x396   : > { %p3553_p8 = pneg %p3552_p7 }
 0x397   : > { %p3559_p13 = por %p3558_p12, %p3557_p11 }
 0x399   : > { %p3560_p0 = pnand %p3559_p13, %p3553_p8 }
 0x39b   : > { %3563 = shalt.err (!%p3560_p0)
}
 0x39c   : > { %3290 = dma.vmem_to_hbm [thread:$0]  (%p3683_p5), %s4854_s26, 128, %s4852_s9, %s3020_s10  }
 0x39d PF: > { %p3296_p1 = scmp.ge.s32.totalorder %s3598_s24, 2  ;;  %s3046_s20 = sand.u32 1, %s3586_s21  }
 0x39e   : > { %s3047_s28 = scalar_lea.sflag [#allocation3], %s3046_s20 }
 0x39f   : > { %p3293_p2 = pnand %p3296_p1, %p3687_p6 }
 0x3a1   : > { %3581 = dma.done.wait (!%p3293_p2), %s3047_s28, 128  }
 0x3a2   : > { %3583 = vsyncadd (!%p3293_p2), %s3047_s28, 4294967168  ;;  %p16_p3 = scmp.ge.s32.totalorder %s3670_s27, 4   ;;  %s4934_s21 = smov %s3590_s22 }
 0x3a3   : > { %s4935_s22 = smov %s3594_s23  ;;  %s4936_s23 = smov %s3681_s30 }
 0x3a4   : > { %s4937_s24 = smov %s3670_s27  ;;  %18 = sbr.rel (!%p16_p3) target bundleno = 3 (0x3), region = 79 }
 0x3ab   :  { %3052 = vsyncpa [#allocation3], 1 }
 0x3ac   :  { %3054 = vsyncpa [#allocation3 + $0x1], 1 }

</bundles_post_ra>
